<compile_context>
chip_gen: v5e
topology: v5e:2x2
jax: 0.10.0
libtpu: 0.0.40
codegen_flags: <defaults>
</compile_context>

<pallas_src>
import functools

import jax
import jax.numpy as jnp
from jax.experimental import pallas as pl
from jax.experimental.pallas import tpu as pltpu


def _flash_attention_kernel(xq_ref, xk_ref, gamma_ref, beta_ref,
                            wq_ref, wkv_ref, wo_ref,
                            o_ref,
                            q_scr, m_scr, l_scr, acc_scr,
                            *, heads, dim_head, eps):
    ki = pl.program_id(2)
    nk = pl.num_programs(2)
    tq = xq_ref.shape[1]                      # static query-block length

    # ---- once per (batch, query-block): LayerNorm -> Q projection -> head stacking ----
    @pl.when(ki == 0)
    def _init():
        x = xq_ref[0].astype(jnp.float32)                        # (TQ, DIM)
        mean = jnp.mean(x, axis=-1, keepdims=True)
        var = jnp.mean(x * x, axis=-1, keepdims=True) - mean * mean   # one-pass variance
        xn = (x - mean) * jax.lax.rsqrt(var + eps)
        xn = xn * gamma_ref[0] + beta_ref[0]
        # scale is already folded into wq_t on the host
        q = jnp.dot(xn.astype(jnp.bfloat16), wq_ref[...],
                    preferred_element_type=jnp.float32)          # (TQ, H*Dh)
        # head-major stacking: rows [h*TQ:(h+1)*TQ] = head h  (sublane-direction concat)
        q_scr[...] = jnp.concatenate(
            [q[:, h * dim_head:(h + 1) * dim_head] for h in range(heads)],
            axis=0).astype(jnp.bfloat16)                         # (H*TQ, Dh)
        m_scr[...] = jnp.full(m_scr.shape, -jnp.inf, dtype=m_scr.dtype)
        l_scr[...] = jnp.zeros(l_scr.shape, dtype=l_scr.dtype)
        acc_scr[...] = jnp.zeros(acc_scr.shape, dtype=acc_scr.dtype)

    # ---- every kv chunk: project K/V from the un-normed x, online softmax update ----
    xk = xk_ref[0].astype(jnp.bfloat16)                          # (TK, DIM)
    kv = jnp.dot(xk, wkv_ref[...], preferred_element_type=jnp.float32)   # (TK, 2*Dh)
    k = kv[:, :dim_head].astype(jnp.bfloat16)                    # (TK, Dh)  shared by all heads
    v = kv[:, dim_head:].astype(jnp.bfloat16)                    # (TK, Dh)

    # one QK^T matmul for all heads; contract last dims (no explicit transpose)
    s = jax.lax.dot_general(q_scr[...], k, (((1,), (1,)), ((), ())),
                            preferred_element_type=jnp.float32)  # (H*TQ, TK)

    m_prev = m_scr[...]
    m_new = jnp.maximum(m_prev, jnp.max(s, axis=-1, keepdims=True))
    alpha = jnp.exp(m_prev - m_new)
    p = jnp.exp(s - m_new)
    l_scr[...] = alpha * l_scr[...] + jnp.sum(p, axis=-1, keepdims=True)
    acc_scr[...] = alpha * acc_scr[...] + jnp.dot(
        p.astype(jnp.bfloat16), v, preferred_element_type=jnp.float32)   # (H*TQ, Dh)
    m_scr[...] = m_new

    # ---- once per (batch, query-block): normalize, un-stack heads, output projection ----
    @pl.when(ki == nk - 1)
    def _finalize():
        out = acc_scr[...] * pl.reciprocal(l_scr[...], approx=True)      # (H*TQ, Dh)
        out_cat = jnp.concatenate(
            [out[h * tq:(h + 1) * tq, :] for h in range(heads)], axis=-1)  # (TQ, H*Dh) = 'b n (h d)'
        y = jnp.dot(out_cat.astype(jnp.bfloat16), wo_ref[...],
                    preferred_element_type=jnp.float32)                  # (TQ, DIM)
        o_ref[0] = y.astype(o_ref.dtype)


def _pick_tile(n, max_tile):
    """Largest multiple of 8 that divides n and is <= max_tile (else the full extent)."""
    best = None
    t = 8
    while t <= min(n, max_tile):
        if n % t == 0:
            best = t
        t += 8
    return best if best is not None else n


def transformer_attention(x, gamma, beta, wq, wkv, wo, *, heads,
                          block_q=128, block_k=256):
    """x: (B, N, DIM); wq: (INNER, DIM); wkv: (2*Dh, DIM); wo: (DIM, INNER)."""
    B, N, DIM = x.shape
    inner_dim = wq.shape[0]
    dim_head = inner_dim // heads
    scale = dim_head ** -0.5

    TQ = _pick_tile(N, block_q)
    TK = _pick_tile(N, block_k)
    nq = N // TQ
    nk = N // TK

    # host-side glue: pre-transpose, fold softmax scale into wq, cast weights to bf16
    wq_t = (wq.T * scale).astype(jnp.bfloat16)       # (DIM, INNER)
    wkv_t = wkv.T.astype(jnp.bfloat16)               # (DIM, 2*Dh)
    wo_t = wo.T.astype(jnp.bfloat16)                 # (INNER, DIM)
    gamma2 = gamma.reshape(1, DIM).astype(jnp.float32)
    beta2 = beta.reshape(1, DIM).astype(jnp.float32)

    kernel = functools.partial(_flash_attention_kernel,
                               heads=heads, dim_head=dim_head, eps=1e-5)

    return pl.pallas_call(
        kernel,
        out_shape=jax.ShapeDtypeStruct((B, N, DIM), x.dtype),
        grid_spec=pltpu.PrefetchScalarGridSpec(
            num_scalar_prefetch=0,
            grid=(B, nq, nk),
            in_specs=[
                pl.BlockSpec((1, TQ, DIM), lambda b, qi, ki: (b, qi, 0)),   # x (query rows)
                pl.BlockSpec((1, TK, DIM), lambda b, qi, ki: (b, ki, 0)),   # x (key/value rows)
                pl.BlockSpec((1, DIM), lambda b, qi, ki: (0, 0)),           # gamma
                pl.BlockSpec((1, DIM), lambda b, qi, ki: (0, 0)),           # beta
                pl.BlockSpec((DIM, inner_dim), lambda b, qi, ki: (0, 0)),   # wq_t (scaled)
                pl.BlockSpec((DIM, 2 * dim_head), lambda b, qi, ki: (0, 0)),# wkv_t
                pl.BlockSpec((inner_dim, DIM), lambda b, qi, ki: (0, 0)),   # wo_t
            ],
            out_specs=pl.BlockSpec((1, TQ, DIM), lambda b, qi, ki: (b, qi, 0)),
            scratch_shapes=[
                pltpu.VMEM((heads * TQ, dim_head), jnp.bfloat16),   # stacked Q (cached per q-block)
                pltpu.VMEM((heads * TQ, 1), jnp.float32),           # running max m
                pltpu.VMEM((heads * TQ, 1), jnp.float32),           # running sum l
                pltpu.VMEM((heads * TQ, dim_head), jnp.float32),    # output accumulator
            ],
        ),
        compiler_params=pltpu.CompilerParams(
            dimension_semantics=("parallel", "parallel", "arbitrary"),
            vmem_limit_bytes=32 * 1024 * 1024,
        ),
    )(x, x, gamma2, beta2, wq_t, wkv_t, wo_t)


def transformer_attention_ref(x, gamma, beta, wq, wkv, wo, *, heads):
    """Pure-JAX f32 reference mirroring the PyTorch forward (no context / masks / dropout)."""
    B, N, DIM = x.shape
    inner_dim = wq.shape[0]
    dim_head = inner_dim // heads
    scale = dim_head ** -0.5

    kv_input = x
    mean = jnp.mean(x, axis=-1, keepdims=True)
    var = jnp.mean(jnp.square(x - mean), axis=-1, keepdims=True)
    xn = (x - mean) / jnp.sqrt(var + 1e-5) * gamma + beta

    q = xn @ wq.T                                    # (B, N, H*Dh)
    kv = kv_input @ wkv.T                            # (B, N, 2*Dh)
    k, v = kv[..., :dim_head], kv[..., dim_head:]
    q = q.reshape(B, N, heads, dim_head).transpose(0, 2, 1, 3) * scale  # (B,H,N,Dh)
    sim = jnp.einsum('bhid,bjd->bhij', q, k)
    attn = jax.nn.softmax(sim, axis=-1)
    out = jnp.einsum('bhij,bjd->bhid', attn, v)
    out = out.transpose(0, 2, 1, 3).reshape(B, N, inner_dim)
    return out @ wo.T


if __name__ == "__main__":
    B, N, DIM, HEADS = 2, 16, 64, 8
    DIM_HEAD = DIM // HEADS
    INNER = DIM_HEAD * HEADS

    key = jax.random.PRNGKey(0)
    kx, kq, kkv, ko = jax.random.split(key, 4)

    x = jax.random.normal(kx, (B, N, DIM), dtype=jnp.float32)
    # deterministic synthetic parameters (LayerNorm: gamma=1, beta=0 as in __init__)
    gamma = jnp.ones((DIM,), jnp.float32)
    beta = jnp.zeros((DIM,), jnp.float32)
    wq = jax.random.normal(kq, (INNER, DIM), dtype=jnp.float32) / jnp.sqrt(DIM)
    wkv = jax.random.normal(kkv, (2 * DIM_HEAD, DIM), dtype=jnp.float32) / jnp.sqrt(DIM)
    wo = jax.random.normal(ko, (DIM, INNER), dtype=jnp.float32) / jnp.sqrt(INNER)

    y_ref = transformer_attention_ref(x, gamma, beta, wq, wkv, wo, heads=HEADS)

    # 1) whole sequence in one block (single kv chunk)
    y1 = transformer_attention(x, gamma, beta, wq, wkv, wo, heads=HEADS)
    y1 = jax.block_until_ready(y1)
    assert y1.shape == (B, N, DIM)
    assert jnp.allclose(y1, y_ref, atol=5e-2, rtol=5e-2), "mismatch vs reference (single block)"

    # 2) exercise the tiled flash path: 2 query blocks x 2 kv blocks per sequence
    y2 = transformer_attention(x, gamma, beta, wq, wkv, wo, heads=HEADS,
                               block_q=8, block_k=8)
    y2 = jax.block_until_ready(y2)
    assert jnp.allclose(y2, y_ref, atol=5e-2, rtol=5e-2), "mismatch vs reference (tiled flash)"

    print("KERNEL_OK")
</pallas_src>

<mosaic_0001>
module attributes {stable_mosaic.version = 11 : i64} {
  func.func @_flash_attention_kernel(%arg0: i32, %arg1: i32, %arg2: i32, %arg3: memref<1x16x64xf32, #tpu.memory_space<vmem>>, %arg4: memref<1x16x64xf32, #tpu.memory_space<vmem>>, %arg5: memref<1x64xf32, #tpu.memory_space<vmem>>, %arg6: memref<1x64xf32, #tpu.memory_space<vmem>>, %arg7: memref<64x64xbf16, #tpu.memory_space<vmem>>, %arg8: memref<64x16xbf16, #tpu.memory_space<vmem>>, %arg9: memref<64x64xbf16, #tpu.memory_space<vmem>>, %arg10: memref<1x16x64xf32, #tpu.memory_space<vmem>>, %arg11: memref<128x8xbf16, #tpu.memory_space<vmem>>, %arg12: memref<128x1xf32, #tpu.memory_space<vmem>>, %arg13: memref<128x1xf32, #tpu.memory_space<vmem>>, %arg14: memref<128x8xf32, #tpu.memory_space<vmem>>) attributes {dimension_semantics = [#tpu.dimension_semantics<parallel>, #tpu.dimension_semantics<parallel>, #tpu.dimension_semantics<arbitrary>], iteration_bounds = array<i64: 2, 1, 1>, scalar_prefetch = 0 : i64, scratch_operands = 4 : i64, tpu.core_type = #tpu.core_type<tc>, window_params = [{transform_indices = @transform_0, window_bounds = array<i64: 1, 16, 64>}, {transform_indices = @transform_1, window_bounds = array<i64: 1, 16, 64>}, {pipeline_mode = #tpu.pipeline_mode<synchronous>, transform_indices = @transform_2, window_bounds = array<i64: 1, 64>}, {pipeline_mode = #tpu.pipeline_mode<synchronous>, transform_indices = @transform_3, window_bounds = array<i64: 1, 64>}, {pipeline_mode = #tpu.pipeline_mode<synchronous>, transform_indices = @transform_4, window_bounds = array<i64: 64, 64>}, {pipeline_mode = #tpu.pipeline_mode<synchronous>, transform_indices = @transform_5, window_bounds = array<i64: 64, 16>}, {pipeline_mode = #tpu.pipeline_mode<synchronous>, transform_indices = @transform_6, window_bounds = array<i64: 64, 64>}, {transform_indices = @transform_7, window_bounds = array<i64: 1, 16, 64>}]} {
    %c0_i32 = arith.constant 0 : i32
    %0 = arith.cmpi eq, %arg2, %c0_i32 : i32
    %1 = arith.extui %0 : i1 to i32
    %c0_i32_0 = arith.constant 0 : i32
    %2 = arith.cmpi ne, %1, %c0_i32_0 : i32
    scf.if %2 {
      %c0_25 = arith.constant 0 : index
      %c0_26 = arith.constant 0 : index
      %c0_27 = arith.constant 0 : index
      %40 = vector.load %arg3[%c0_25, %c0_26, %c0_27] : memref<1x16x64xf32, #tpu.memory_space<vmem>>, vector<1x16x64xf32>
      %41 = vector.shape_cast %40 : vector<1x16x64xf32> to vector<16x64xf32>
      %cst_28 = arith.constant dense<0.000000e+00> : vector<16xf32>
      %42 = vector.multi_reduction <add>, %41, %cst_28 [1] : vector<16x64xf32> to vector<16xf32>
      %43 = vector.shape_cast %42 : vector<16xf32> to vector<16x1xf32>
      %cst_29 = arith.constant 6.400000e+01 : f32
      %44 = vector.broadcast %cst_29 : f32 to vector<16x1xf32>
      %45 = arith.divf %43, %44 : vector<16x1xf32>
      %46 = arith.mulf %41, %41 : vector<16x64xf32>
      %cst_30 = arith.constant dense<0.000000e+00> : vector<16xf32>
      %47 = vector.multi_reduction <add>, %46, %cst_30 [1] : vector<16x64xf32> to vector<16xf32>
      %48 = vector.shape_cast %47 : vector<16xf32> to vector<16x1xf32>
      %cst_31 = arith.constant 6.400000e+01 : f32
      %49 = vector.broadcast %cst_31 : f32 to vector<16x1xf32>
      %50 = arith.divf %48, %49 : vector<16x1xf32>
      %51 = arith.mulf %45, %45 : vector<16x1xf32>
      %52 = arith.subf %50, %51 : vector<16x1xf32>
      %53 = vector.broadcast %45 : vector<16x1xf32> to vector<16x64xf32>
      %54 = arith.subf %41, %53 : vector<16x64xf32>
      %cst_32 = arith.constant 9.99999974E-6 : f32
      %55 = vector.broadcast %cst_32 : f32 to vector<16x1xf32>
      %56 = arith.addf %52, %55 : vector<16x1xf32>
      %57 = math.rsqrt %56 : vector<16x1xf32>
      %58 = vector.broadcast %57 : vector<16x1xf32> to vector<16x64xf32>
      %59 = arith.mulf %54, %58 : vector<16x64xf32>
      %c0_33 = arith.constant 0 : index
      %c0_34 = arith.constant 0 : index
      %60 = vector.load %arg5[%c0_33, %c0_34] : memref<1x64xf32, #tpu.memory_space<vmem>>, vector<1x64xf32>
      %61 = vector.shape_cast %60 : vector<1x64xf32> to vector<64xf32>
      %62 = vector.shape_cast %61 : vector<64xf32> to vector<1x64xf32>
      %63 = vector.broadcast %62 : vector<1x64xf32> to vector<16x64xf32>
      %64 = arith.mulf %59, %63 : vector<16x64xf32>
      %c0_35 = arith.constant 0 : index
      %c0_36 = arith.constant 0 : index
      %65 = vector.load %arg6[%c0_35, %c0_36] : memref<1x64xf32, #tpu.memory_space<vmem>>, vector<1x64xf32>
      %66 = vector.shape_cast %65 : vector<1x64xf32> to vector<64xf32>
      %67 = vector.shape_cast %66 : vector<64xf32> to vector<1x64xf32>
      %68 = vector.broadcast %67 : vector<1x64xf32> to vector<16x64xf32>
      %69 = arith.addf %64, %68 : vector<16x64xf32>
      %70 = arith.truncf %69 : vector<16x64xf32> to vector<16x64xbf16>
      %c0_37 = arith.constant 0 : index
      %c0_38 = arith.constant 0 : index
      %71 = vector.load %arg7[%c0_37, %c0_38] : memref<64x64xbf16, #tpu.memory_space<vmem>>, vector<64x64xbf16>
      %cst_39 = arith.constant dense<0.000000e+00> : vector<16x64xf32>
      %72 = tpu.matmul %70, %71, %cst_39 {dimension_numbers = #tpu.dot_dimension_numbers<[1], [0], [0], [1], [0, 0, 1, 1], [], []>} : vector<16x64xbf16>, vector<64x64xbf16>, vector<16x64xf32> -> vector<16x64xf32>
      %73 = vector.extract_strided_slice %72 {offsets = [0, 0], sizes = [16, 8], strides = [1, 1]} : vector<16x64xf32> to vector<16x8xf32>
      %74 = vector.extract_strided_slice %72 {offsets = [0, 8], sizes = [16, 8], strides = [1, 1]} : vector<16x64xf32> to vector<16x8xf32>
      %75 = vector.extract_strided_slice %72 {offsets = [0, 16], sizes = [16, 8], strides = [1, 1]} : vector<16x64xf32> to vector<16x8xf32>
      %76 = vector.extract_strided_slice %72 {offsets = [0, 24], sizes = [16, 8], strides = [1, 1]} : vector<16x64xf32> to vector<16x8xf32>
      %77 = vector.extract_strided_slice %72 {offsets = [0, 32], sizes = [16, 8], strides = [1, 1]} : vector<16x64xf32> to vector<16x8xf32>
      %78 = vector.extract_strided_slice %72 {offsets = [0, 40], sizes = [16, 8], strides = [1, 1]} : vector<16x64xf32> to vector<16x8xf32>
      %79 = vector.extract_strided_slice %72 {offsets = [0, 48], sizes = [16, 8], strides = [1, 1]} : vector<16x64xf32> to vector<16x8xf32>
      %80 = vector.extract_strided_slice %72 {offsets = [0, 56], sizes = [16, 8], strides = [1, 1]} : vector<16x64xf32> to vector<16x8xf32>
      %81 = tpu.concatenate %73, %74, %75, %76, %77, %78, %79, %80 in 0 : vector<16x8xf32>, vector<16x8xf32>, vector<16x8xf32>, vector<16x8xf32>, vector<16x8xf32>, vector<16x8xf32>, vector<16x8xf32>, vector<16x8xf32> -> vector<128x8xf32>
      %82 = arith.truncf %81 : vector<128x8xf32> to vector<128x8xbf16>
      %c0_40 = arith.constant 0 : index
      %c0_41 = arith.constant 0 : index
      %83 = vector.load %arg11[%c0_40, %c0_41] : memref<128x8xbf16, #tpu.memory_space<vmem>>, vector<128x8xbf16>
      tpu.vector_store %arg11[%c0_40, %c0_41], %82 {strides = array<i32>} : memref<128x8xbf16, #tpu.memory_space<vmem>>, vector<128x8xbf16>,
      %cst_42 = arith.constant 0xFF800000 : f32
      %84 = vector.broadcast %cst_42 : f32 to vector<128x1xf32>
      %c0_43 = arith.constant 0 : index
      %c0_44 = arith.constant 0 : index
      %85 = vector.load %arg12[%c0_43, %c0_44] : memref<128x1xf32, #tpu.memory_space<vmem>>, vector<128x1xf32>
      tpu.vector_store %arg12[%c0_43, %c0_44], %84 {strides = array<i32>} : memref<128x1xf32, #tpu.memory_space<vmem>>, vector<128x1xf32>,
      %cst_45 = arith.constant 0.000000e+00 : f32
      %86 = vector.broadcast %cst_45 : f32 to vector<128x1xf32>
      %c0_46 = arith.constant 0 : index
      %c0_47 = arith.constant 0 : index
      %87 = vector.load %arg13[%c0_46, %c0_47] : memref<128x1xf32, #tpu.memory_space<vmem>>, vector<128x1xf32>
      tpu.vector_store %arg13[%c0_46, %c0_47], %86 {strides = array<i32>} : memref<128x1xf32, #tpu.memory_space<vmem>>, vector<128x1xf32>,
      %cst_48 = arith.constant 0.000000e+00 : f32
      %88 = vector.broadcast %cst_48 : f32 to vector<128x8xf32>
      %c0_49 = arith.constant 0 : index
      %c0_50 = arith.constant 0 : index
      %89 = vector.load %arg14[%c0_49, %c0_50] : memref<128x8xf32, #tpu.memory_space<vmem>>, vector<128x8xf32>
      tpu.vector_store %arg14[%c0_49, %c0_50], %88 {strides = array<i32>} : memref<128x8xf32, #tpu.memory_space<vmem>>, vector<128x8xf32>,
    } else {
    }
    %c0 = arith.constant 0 : index
    %c0_1 = arith.constant 0 : index
    %c0_2 = arith.constant 0 : index
    %3 = vector.load %arg4[%c0, %c0_1, %c0_2] : memref<1x16x64xf32, #tpu.memory_space<vmem>>, vector<1x16x64xf32>
    %4 = vector.shape_cast %3 : vector<1x16x64xf32> to vector<16x64xf32>
    %5 = arith.truncf %4 : vector<16x64xf32> to vector<16x64xbf16>
    %c0_3 = arith.constant 0 : index
    %c0_4 = arith.constant 0 : index
    %6 = vector.load %arg8[%c0_3, %c0_4] : memref<64x16xbf16, #tpu.memory_space<vmem>>, vector<64x16xbf16>
    %cst = arith.constant dense<0.000000e+00> : vector<16x16xf32>
    %7 = tpu.matmul %5, %6, %cst {dimension_numbers = #tpu.dot_dimension_numbers<[1], [0], [0], [1], [0, 0, 1, 1], [], []>} : vector<16x64xbf16>, vector<64x16xbf16>, vector<16x16xf32> -> vector<16x16xf32>
    %8 = vector.extract_strided_slice %7 {offsets = [0, 0], sizes = [16, 8], strides = [1, 1]} : vector<16x16xf32> to vector<16x8xf32>
    %9 = arith.truncf %8 : vector<16x8xf32> to vector<16x8xbf16>
    %10 = vector.extract_strided_slice %7 {offsets = [0, 8], sizes = [16, 8], strides = [1, 1]} : vector<16x16xf32> to vector<16x8xf32>
    %11 = arith.truncf %10 : vector<16x8xf32> to vector<16x8xbf16>
    %c0_5 = arith.constant 0 : index
    %c0_6 = arith.constant 0 : index
    %12 = vector.load %arg11[%c0_5, %c0_6] : memref<128x8xbf16, #tpu.memory_space<vmem>>, vector<128x8xbf16>
    %cst_7 = arith.constant dense<0.000000e+00> : vector<128x16xf32>
    %13 = tpu.matmul %12, %9, %cst_7 {dimension_numbers = #tpu.dot_dimension_numbers<[1], [1], [0], [0], [0, 0, 1, 0], [], []>} : vector<128x8xbf16>, vector<16x8xbf16>, vector<128x16xf32> -> vector<128x16xf32>
    %c0_8 = arith.constant 0 : index
    %c0_9 = arith.constant 0 : index
    %14 = vector.load %arg12[%c0_8, %c0_9] : memref<128x1xf32, #tpu.memory_space<vmem>>, vector<128x1xf32>
    %cst_10 = arith.constant dense<0xFF800000> : vector<128xf32>
    %15 = vector.multi_reduction <maximumf>, %13, %cst_10 [1] : vector<128x16xf32> to vector<128xf32>
    %16 = vector.shape_cast %15 : vector<128xf32> to vector<128x1xf32>
    %17 = arith.maximumf %14, %16 : vector<128x1xf32>
    %18 = arith.subf %14, %17 : vector<128x1xf32>
    %19 = math.exp %18 : vector<128x1xf32>
    %20 = vector.broadcast %17 : vector<128x1xf32> to vector<128x16xf32>
    %21 = arith.subf %13, %20 : vector<128x16xf32>
    %22 = math.exp %21 : vector<128x16xf32>
    %c0_11 = arith.constant 0 : index
    %c0_12 = arith.constant 0 : index
    %23 = vector.load %arg13[%c0_11, %c0_12] : memref<128x1xf32, #tpu.memory_space<vmem>>, vector<128x1xf32>
    %24 = arith.mulf %19, %23 : vector<128x1xf32>
    %cst_13 = arith.constant dense<0.000000e+00> : vector<128xf32>
    %25 = vector.multi_reduction <add>, %22, %cst_13 [1] : vector<128x16xf32> to vector<128xf32>
    %26 = vector.shape_cast %25 : vector<128xf32> to vector<128x1xf32>
    %27 = arith.addf %24, %26 : vector<128x1xf32>
    %c0_14 = arith.constant 0 : index
    %c0_15 = arith.constant 0 : index
    %28 = vector.load %arg13[%c0_14, %c0_15] : memref<128x1xf32, #tpu.memory_space<vmem>>, vector<128x1xf32>
    tpu.vector_store %arg13[%c0_14, %c0_15], %27 {strides = array<i32>} : memref<128x1xf32, #tpu.memory_space<vmem>>, vector<128x1xf32>,
    %c0_16 = arith.constant 0 : index
    %c0_17 = arith.constant 0 : index
    %29 = vector.load %arg14[%c0_16, %c0_17] : memref<128x8xf32, #tpu.memory_space<vmem>>, vector<128x8xf32>
    %30 = vector.broadcast %19 : vector<128x1xf32> to vector<128x8xf32>
    %31 = arith.mulf %30, %29 : vector<128x8xf32>
    %32 = arith.truncf %22 : vector<128x16xf32> to vector<128x16xbf16>
    %cst_18 = arith.constant dense<0.000000e+00> : vector<128x8xf32>
    %33 = tpu.matmul %32, %11, %cst_18 {dimension_numbers = #tpu.dot_dimension_numbers<[1], [0], [0], [1], [0, 0, 1, 1], [], []>} : vector<128x16xbf16>, vector<16x8xbf16>, vector<128x8xf32> -> vector<128x8xf32>
    %34 = arith.addf %31, %33 : vector<128x8xf32>
    %c0_19 = arith.constant 0 : index
    %c0_20 = arith.constant 0 : index
    %35 = vector.load %arg14[%c0_19, %c0_20] : memref<128x8xf32, #tpu.memory_space<vmem>>, vector<128x8xf32>
    tpu.vector_store %arg14[%c0_19, %c0_20], %34 {strides = array<i32>} : memref<128x8xf32, #tpu.memory_space<vmem>>, vector<128x8xf32>,
    %c0_21 = arith.constant 0 : index
    %c0_22 = arith.constant 0 : index
    %36 = vector.load %arg12[%c0_21, %c0_22] : memref<128x1xf32, #tpu.memory_space<vmem>>, vector<128x1xf32>
    tpu.vector_store %arg12[%c0_21, %c0_22], %17 {strides = array<i32>} : memref<128x1xf32, #tpu.memory_space<vmem>>, vector<128x1xf32>,
    %c0_i32_23 = arith.constant 0 : i32
    %37 = arith.cmpi eq, %arg2, %c0_i32_23 : i32
    %38 = arith.extui %37 : i1 to i32
    %c0_i32_24 = arith.constant 0 : i32
    %39 = arith.cmpi ne, %38, %c0_i32_24 : i32
    scf.if %39 {
      %c0_25 = arith.constant 0 : index
      %c0_26 = arith.constant 0 : index
      %40 = vector.load %arg14[%c0_25, %c0_26] : memref<128x8xf32, #tpu.memory_space<vmem>>, vector<128x8xf32>
      %c0_27 = arith.constant 0 : index
      %c0_28 = arith.constant 0 : index
      %41 = vector.load %arg13[%c0_27, %c0_28] : memref<128x1xf32, #tpu.memory_space<vmem>>, vector<128x1xf32>
      %42 = tpu.reciprocal %41 {approx = true} : vector<128x1xf32> -> vector<128x1xf32>
      %43 = vector.broadcast %42 : vector<128x1xf32> to vector<128x8xf32>
      %44 = arith.mulf %40, %43 : vector<128x8xf32>
      %45 = vector.extract_strided_slice %44 {offsets = [0, 0], sizes = [16, 8], strides = [1, 1]} : vector<128x8xf32> to vector<16x8xf32>
      %46 = vector.extract_strided_slice %44 {offsets = [16, 0], sizes = [16, 8], strides = [1, 1]} : vector<128x8xf32> to vector<16x8xf32>
      %47 = vector.extract_strided_slice %44 {offsets = [32, 0], sizes = [16, 8], strides = [1, 1]} : vector<128x8xf32> to vector<16x8xf32>
      %48 = vector.extract_strided_slice %44 {offsets = [48, 0], sizes = [16, 8], strides = [1, 1]} : vector<128x8xf32> to vector<16x8xf32>
      %49 = vector.extract_strided_slice %44 {offsets = [64, 0], sizes = [16, 8], strides = [1, 1]} : vector<128x8xf32> to vector<16x8xf32>
      %50 = vector.extract_strided_slice %44 {offsets = [80, 0], sizes = [16, 8], strides = [1, 1]} : vector<128x8xf32> to vector<16x8xf32>
      %51 = vector.extract_strided_slice %44 {offsets = [96, 0], sizes = [16, 8], strides = [1, 1]} : vector<128x8xf32> to vector<16x8xf32>
      %52 = vector.extract_strided_slice %44 {offsets = [112, 0], sizes = [16, 8], strides = [1, 1]} : vector<128x8xf32> to vector<16x8xf32>
      %53 = tpu.concatenate %45, %46, %47, %48, %49, %50, %51, %52 in 1 : vector<16x8xf32>, vector<16x8xf32>, vector<16x8xf32>, vector<16x8xf32>, vector<16x8xf32>, vector<16x8xf32>, vector<16x8xf32>, vector<16x8xf32> -> vector<16x64xf32>
      %54 = arith.truncf %53 : vector<16x64xf32> to vector<16x64xbf16>
      %c0_29 = arith.constant 0 : index
      %c0_30 = arith.constant 0 : index
      %55 = vector.load %arg9[%c0_29, %c0_30] : memref<64x64xbf16, #tpu.memory_space<vmem>>, vector<64x64xbf16>
      %cst_31 = arith.constant dense<0.000000e+00> : vector<16x64xf32>
      %56 = tpu.matmul %54, %55, %cst_31 {dimension_numbers = #tpu.dot_dimension_numbers<[1], [0], [0], [1], [0, 0, 1, 1], [], []>} : vector<16x64xbf16>, vector<64x64xbf16>, vector<16x64xf32> -> vector<16x64xf32>
      %c0_32 = arith.constant 0 : index
      %c0_33 = arith.constant 0 : index
      %c0_34 = arith.constant 0 : index
      %57 = vector.load %arg10[%c0_32, %c0_33, %c0_34] : memref<1x16x64xf32, #tpu.memory_space<vmem>>, vector<1x16x64xf32>
      %58 = vector.shape_cast %57 : vector<1x16x64xf32> to vector<16x64xf32>
      %59 = vector.shape_cast %56 : vector<16x64xf32> to vector<1x16x64xf32>
      tpu.vector_store %arg10[%c0_32, %c0_33, %c0_34], %59 {strides = array<i32>} : memref<1x16x64xf32, #tpu.memory_space<vmem>>, vector<1x16x64xf32>,
    } else {
    }
    return
  }
  func.func @transform_0(%arg0: i32, %arg1: i32, %arg2: i32) -> (i32, i32, i32) {
    %c0_i32 = arith.constant 0 : i32
    %c0_i32_0 = arith.constant 0 : i32
    return %arg0, %arg1, %c0_i32 : i32, i32, i32
  }
  func.func @transform_1(%arg0: i32, %arg1: i32, %arg2: i32) -> (i32, i32, i32) {
    %c0_i32 = arith.constant 0 : i32
    %c0_i32_0 = arith.constant 0 : i32
    return %arg0, %arg2, %c0_i32 : i32, i32, i32
  }
  func.func @transform_2(%arg0: i32, %arg1: i32, %arg2: i32) -> (i32, i32) {
    %c0_i32 = arith.constant 0 : i32
    %c0_i32_0 = arith.constant 0 : i32
    %c0_i32_1 = arith.constant 0 : i32
    return %c0_i32, %c0_i32_0 : i32, i32
  }
  func.func @transform_3(%arg0: i32, %arg1: i32, %arg2: i32) -> (i32, i32) {
    %c0_i32 = arith.constant 0 : i32
    %c0_i32_0 = arith.constant 0 : i32
    %c0_i32_1 = arith.constant 0 : i32
    return %c0_i32, %c0_i32_0 : i32, i32
  }
  func.func @transform_4(%arg0: i32, %arg1: i32, %arg2: i32) -> (i32, i32) {
    %c0_i32 = arith.constant 0 : i32
    %c0_i32_0 = arith.constant 0 : i32
    %c0_i32_1 = arith.constant 0 : i32
    return %c0_i32, %c0_i32_0 : i32, i32
  }
  func.func @transform_5(%arg0: i32, %arg1: i32, %arg2: i32) -> (i32, i32) {
    %c0_i32 = arith.constant 0 : i32
    %c0_i32_0 = arith.constant 0 : i32
    %c0_i32_1 = arith.constant 0 : i32
    return %c0_i32, %c0_i32_0 : i32, i32
  }
  func.func @transform_6(%arg0: i32, %arg1: i32, %arg2: i32) -> (i32, i32) {
    %c0_i32 = arith.constant 0 : i32
    %c0_i32_0 = arith.constant 0 : i32
    %c0_i32_1 = arith.constant 0 : i32
    return %c0_i32, %c0_i32_0 : i32, i32
  }
  func.func @transform_7(%arg0: i32, %arg1: i32, %arg2: i32) -> (i32, i32, i32) {
    %c0_i32 = arith.constant 0 : i32
    %c0_i32_0 = arith.constant 0 : i32
    return %arg0, %arg1, %c0_i32 : i32, i32, i32
  }
}

</mosaic_0001>

<bundles_post_ra>
// kernel: tpu_custom_call.1
= control target key start
LH: loop header
LB: loop body
LE: loop exit
PB: predicated region body
PF: predicated region fallthrough
CT: control target
= control target key end

     0   :  { %s3248_s0 = inlined_call_operand.vmem [shape: f32[2,16,64], index: 0, kind: input, shape index: {}]   ;;  %s3249_s1 = inlined_call_operand.hbm [shape: f32[2,16,64], index: 1, kind: input, shape index: {}]   ;;  %s3250_s2 = inlined_call_operand.vmem [shape: f32[1,64], index: 2, kind: input, shape index: {}]   ;;  %s3251_s3 = inlined_call_operand.vmem [shape: f32[1,64], index: 3, kind: input, shape index: {}]   ;;  %s3252_s4 = inlined_call_operand.hbm [shape: bf16[64,64], index: 4, kind: input, shape index: {}]   ;;  %s3253_s5 = inlined_call_operand.vmem [shape: bf16[64,16], index: 5, kind: input, shape index: {}]   ;;  %s3254_s6 = inlined_call_operand.hbm [shape: bf16[64,64], index: 6, kind: input, shape index: {}]   ;;  %s3255_s7 = inlined_call_operand.hbm [shape: f32[2,16,64], index: 7, kind: output, shape index: {}]  }
   0x1   :  { %3259 = sst [smem:[#allocation19_spill]] %s3252_s4 }
   0x2   :  { %3260 = sst [smem:[#allocation20_spill]] %s3254_s6 }
   0x3   :  { %12 = vsyncpa [#allocation7], 0 }
   0x4   :  { %14 = vsyncpa [#allocation7 + $0x1], 0 }
   0x5   :  { %15 = vsyncpa [#allocation10], 0 }
   0x6   :  { %16 = vsyncpa [#allocation8], 0 }
   0x7   :  { %18 = vsyncpa [#allocation8 + $0x1], 0  ;;  %s2539_s24 = smov 0   ;;  %s2541_s25 = smov 0  }
   0x8   :  { %s2543_s26 = smov 0   ;;  %s2545_s27 = smov 0  }
   0x9   :  { %s2547_s28 = smov 0   ;;  %s2549_s29 = smov 0  }
   0xa LB: > { %3261 = sst [smem:[#allocation16_spill]] %s2452_s24  ;;  %s1868_s30 = sadd.s32 4294967295, %s2472_s29   ;;  %s2472_s29 = sphi %s2549_s29, %s24_s29   ;;  %s2468_s28 = sphi %s2547_s28, %s3283_s28   ;;  %s2464_s27 = sphi %s2545_s27, %s3282_s27   ;;  %s2460_s26 = sphi %s2543_s26, %s3281_s26   ;;  %s2456_s25 = sphi %s2541_s25, %s3280_s25   ;;  %s2452_s24 = sphi %s2539_s24, %s3279_s24  }
   0xb   : > { %s1869_s8 = sadd.s32 4294967294, %s2472_s29   ;;  %p93_p0 = scmp.ne.s32.totalorder %s2456_s25, %s2452_s24 }
   0xc   : > { %p2573_p1 = scmp.eq.s32.totalorder %s1868_s30, 0  ;;  %p2577_p2 = scmp.eq.s32.totalorder %s1868_s30, 1 }
   0xd   : > { %p230_p3 = scmp.eq.s32.totalorder %s1869_s8, 1  ;;  %p1870_p5 = scmp.ge.s32.totalorder %s2472_s29, 1 }
   0xe   : > { %p2583_p4 = por %p2573_p1, %p93_p0  ;;  %p237_p7 = scmp.lt.s32.totalorder %s2472_s29, 3 }
   0xf   : > { %p2588_p6 = por %p230_p3, %p93_p0  ;;  %s3267_s4 = sld [smem:[#allocation19_spill]] }
  0x10   : > { %p2596_p8 = pnand %p1870_p5, %p237_p7  ;;  %s2474_s17 = smov [#allocation9]  }
  0x11   : > { %s3265_s12 = scalar_select %p2588_p6, 1, 0 }
  0x12   : > { %p2025_p9 = pneg %p2596_p8  ;;  %s256_s18 = sshll.u32 %s2474_s17, 4  ;;  %s257_s18 = int_to_ptr.vmem [resolvable:$true] %s256_s18 }
  0x13   : > { %3266 = sst [smem:[#allocation17_spill]] %s3265_s12  ;;  %p1873_p11 = scmp.ge.s32.totalorder %s2472_s29, 2 }
  0x14   : > { %p2026_p10 = pnand %p2025_p9, %p2573_p1  ;;  %s3269_s6 = sld [smem:[#allocation20_spill]] }
  0x15   : > { %s254_s15 = sshll.u32 %s3267_s4, 4  ;;  %s2475_s22 = smov 64   ;;  %s255_s15 = int_to_ptr.hbm [resolvable:$true] %s254_s15 }
  0x16   : > { %s2476_s23 = smov 4   ;;  %s2477_s30 = smov [#allocation11]  }
  0x17   : > { %2028 = dma.hbm_to_vmem [thread:$0]  (!%p2026_p10), %s255_s15, 512, %s257_s18, [#allocation10], %s2475_s22, %s2475_s22, %s2476_s23  }
  0x18   : > { %s273_s8 = sshll.u32 %s2477_s30, 4  ;;  %s43_s13 = sadd.s32 1, %s2468_s28  ;;  %s274_s8 = int_to_ptr.vmem [resolvable:$true] %s273_s8 }
  0x19   : > { %s80_s14 = sadd.s32 1, %s2460_s26  ;;  %p45_p12 = scmp.ge.s32.totalorder %s43_s13, 2 }
  0x1a   : > { %s271_s21 = sshll.u32 %s3269_s6, 4  ;;  %p87_p13 = scmp.ne.s32.totalorder %s2460_s26, %s2456_s25  ;;  %s272_s21 = int_to_ptr.hbm [resolvable:$true] %s271_s21 }
  0x1b   : > { %2031 = dma.hbm_to_vmem [thread:$0]  (!%p2026_p10), %s272_s21, 512, %s274_s8, [#allocation10], %s2475_s22, %s2475_s22, %s2476_s23  }
  0x1c   : > { %p88_p0 = scmp.eq.s32.totalorder %s2472_s29, 0  ;;  %p2042_p3 = scmp.lt.s32.totalorder %s2472_s29, 2 }
  0x1d   : > { %s3285_s13 = smov (%p45_p12, %s43_s13), 0  ;;  %p2622_p7 = por %p2577_p2, %p87_p13 }
  0x1e   : > { %3270 = sst [smem:[#allocation18_spill]] %s3285_s13  ;;  %p2616_p5 = por %p88_p0, %p87_p13 }
  0x1f   : > { %s75_s18 = ssub.s32 %s2468_s28, %s3285_s13  ;;  %s300_s19 = sand.u32 1, %s2460_s26  }
  0x20   : > { %p78_p9 = scmp.eq.s32.totalorder %s75_s18, 0  ;;  %s1874_s20 = sshll.u32 %s300_s19, 4 }
  0x21   : > { %s1988_s21 = sshll.u32 %s2468_s28, 4  ;;  %s304_s6 = scalar_lea.vmem [#allocation6], %s1874_s20 }
  0x22   : > { %s2631_s22 = scalar_select %p78_p9, %s2460_s26, %s80_s14  }
  0x23   : > { %s311_s8 = scalar_lea.hbm %s3249_s1, %s1988_s21  ;;  %s314_s12 = sshll.u32 %s304_s6, 4  ;;  %s315_s12 = int_to_ptr.vmem [resolvable:$true] %s314_s12 }
  0x24   : > { %s312_s4 = sshll.u32 %s311_s8, 4  ;;  %p2033_p2 = pnand %p2042_p3, %p2616_p5  ;;  %s313_s4 = int_to_ptr.hbm [resolvable:$true] %s312_s4 }
  0x25   : > { %s301_s10 = scalar_lea.sflag [#allocation7], %s300_s19  ;;  %s2478_s13 = smov 128  }
  0x26   : > { %s2479_s24 = smov 8   ;;  %326 = sbr.rel (%p2596_p8) target bundleno = 1603 (0x643), region = 48 }
  0x27   : > { %2035 = dma.hbm_to_vmem [thread:$0]  (!%p2033_p2), %s313_s4, 256, %s315_s12, %s301_s10, %s2478_s13, %s2478_s13, %s2479_s24  }
  0x28   : > { %s2643_s14 = sand.u32 (!%p2596_p8), 1, %s2456_s25  }
  0x29   : > { %s1878_s6 = sshll.u32 (!%p2596_p8), %s2643_s14, 4  ;;  %s329_s18 = scalar_lea.sflag (!%p2596_p8), [#allocation7], %s2643_s14 }
  0x2a   : > { %s2649_s17 = scalar_lea.vmem (!%p2596_p8), [#allocation6], %s1878_s6 }
  0x2b   : > { %2439 = dma.done.wait (%p2583_p4), %s329_s18, 256  }
  0x2c   : > { %2441 = vsyncadd (%p2583_p4), %s329_s18, 4294967040 }
  0x2d   : > { %2443 = dma.done.wait (%p2573_p1), [#allocation10], 1024  }
  0x2e   : > { %2445 = vsyncadd (%p2573_p1), [#allocation10], 4294966272  ;;  %p384_p8 = scmp.lt.s32.totalorder %s2464_s27, 1  ;;  %vm402_vm0 = vcmask 523264   ;;  %v2480_v8 = vmov 64.0   ;;  %v1993_v14 = vld [vmem:[#allocation9 + $0x18] sm:$0xff] }
  0x2f   : > { %2194 = vrcp.f32 %v2480_v8  ;;  %v1997_v15 = vld [vmem:[%s3253_s5 + $0x18] sm:$0xff]  ;;  %510 = vmatpush.bf16.msra.mxu0 %v1993_v14  ;;  %v1992_v17 = vld [vmem:[#allocation9 + $0x10] sm:$0xff]  ;;  %v1991_v22 = vld [vmem:[#allocation9 + $0x8] sm:$0xff]  ;;  %vm630_vm8 = vcmask 64512   ;;  %vm580_vm9 = vcmask 60416   ;;  %s2482_s12 = smov 104  }
  0x30   : > { %s385_s4 = scalar_select %p384_p8, %s2464_s27, 1  ;;  %690 = vmatpush.bf16.msra.mxu1 %v1997_v15  ;;  %v1996_v18 = vld [vmem:[%s3253_s5 + $0x10] sm:$0xff]  ;;  %v1995_v23 = vld [vmem:[%s3253_s5 + $0x8] sm:$0xff]  ;;  %v1990_v26 = vld [vmem:[#allocation9] sm:$0xff]  ;;  %vm850_vm10 = vcmask 130048   ;;  %vm597_vm11 = vcmask 7168  }
  0x31   : > { %v1994_v28 = vld [vmem:[%s3253_s5] sm:$0xff]  ;;  %v648_v33 = vld [vmem:[%s2649_s17 + $0x8] sm:$0xff]  ;;  %s2483_s16 = smov 120   ;;  %s2485_s9 = smov 88   ;;  %vm1656_vm12 = vcmask 195584   ;;  %vm1659_vm13 = vcmask 261120  }
  0x32   : > { %s1989_s24 = sshll.u32 %s385_s4, 4  ;;  %v647_v32 = vld [vmem:[%s2649_s17] sm:$0xff]  ;;  %s2486_s11 = smov 80   ;;  %vm1662_vm14 = vcmask 326656   ;;  %vm1665_vm15 = vcmask 392192  }
  0x33   : > { %s391_s13 = scalar_lea.vmem %s3248_s0, %s1989_s24  ;;  %511 = vmatpush.bf16.msra.mxu0 %v1992_v17  ;;  %v649_v35 = vpack.c.bf16 %v648_v33, %v647_v32  ;;  %v2192_v54 = vld [vmem:[%s3250_s2] ss:$0 sm:$0xff]  ;;  %s2481_s24 = smov 96  }
  0x34   : > { %v2664_v0 = vld [vmem:[%s391_s13] sm:$0xff]  ;;  %v2670_v3 = vld [vmem:[%s391_s13 + $0x8] sm:$0xff]  ;;  %691 = vmatpush.bf16.msra.mxu1 %v1996_v18  ;;  %s2484_s13 = smov 112   ;;  %s2487_s19 = smov 72  }
  0x35   : > { %v403_v1 = vsel %vm402_vm0, %v2664_v0, 0.0  ;;  %v418_v2 = vmul.f32 %v2664_v0, %v2664_v0  ;;  %v419_v5 = vmul.f32 %v2670_v3, %v2670_v3  ;;  %v406_v6 = vsel %vm402_vm0, %v2670_v3, 0.0  ;;  %v2195_v9 = vpop.eup %2194  ;;  %v2193_v60 = vld [vmem:[%s3251_s3] ss:$0 sm:$0xff]  ;;  %s2491_s20 = smov 8   ;;  %s2492_s21 = smov 24  }
  0x36   : > { %404 = vadd.xlane.f32.xlu0 %v403_v1  ;;  %v410_v10 = vmul.f32 64.0, %v2195_v9  ;;  %vm414_vm1 = vweird.f32 %v2195_v9  ;;  %s2493_s23 = smov 16   ;;  %s2494_s30 = smov 32  }
  0x37   : > { %v420_v4 = vsel %vm402_vm0, %v418_v2, 0.0  ;;  %v423_v7 = vsel %vm402_vm0, %v419_v5, 0.0  ;;  %512 = vmatpush.bf16.msra.mxu0 %v1991_v22  ;;  %s2495_s8 = smov 40   ;;  %s2496_s10 = smov 48  }
  0x38   : > { %421 = vadd.xlane.f32.xlu1 %v420_v4  ;;  %v411_v11 = vsub.f32 1.0, %v410_v10  ;;  %692 = vmatpush.bf16.msra.mxu1 %v1995_v23  ;;  %s2497_s18 = smov 56   ;;  %s2010_s17 = sshll.u32 %s2464_s27, 4 }
  0x39   : > { %s382_s4 = scalar_lea.vmem [#allocation12], %s1878_s6 }
  0x3a   : > { %v412_v12 = vmul.f32 %v2195_v9, %v411_v11 }
  0x3b   : > { %513 = vmatpush.bf16.msra.mxu0 %v1990_v26 }
  0x3c   : > { %v413_v13 = vadd.f32 %v2195_v9, %v412_v12  ;;  %693 = vmatpush.bf16.msra.mxu1 %v1994_v28 }
  0x3e   : > { %407 = vadd.xlane.f32.xlu0 %v406_v6  ;;  %v415_v16 = vsel %vm414_vm1, %v2195_v9, %v413_v13  ;;  %vm1668_vm1 = vcmask 457728  }
  0x3f   : > { %1917 = vmatmul.msk.bf16.vlgmr.msra.gmra.mxu1 %vm402_vm0, %v649_v35 }
  0x40   : > { %424 = vadd.xlane.f32.xlu1 %v423_v7 }
  0xa9   : > { %v405_v19 = vpop.xlane.xlu0 %404 }
  0xaa   : > { %v416_v20 = vmul.f32 %v415_v16, %v405_v19 }
  0xab   : > { %v422_v21 = vpop.xlane.xlu1 %421 }
  0xac   : > { %v428_v24 = vmul.f32 %v416_v20, %v416_v20  ;;  %v426_v25 = vmul.f32 %v422_v21, %v415_v16  ;;  %v432_v51 = vsub.f32 %v2664_v0, %v416_v20 }
  0xae   : > { %v430_v27 = vsub.f32 %v426_v25, %v428_v24 }
  0xb0   : > { %v434_v29 = vadd.f32 1e-05, %v430_v27 }
  0xb1   : > { %v408_v30 = vpop.xlane.xlu0 %407 }
  0xb2   : > { %2196 = vrsqrt.f32 %v434_v29  ;;  %v417_v31 = vmul.f32 %v415_v16, %v408_v30  ;;  %vm442_vm3 = vweird.f32 %v434_v29 }
  0xb3   : > { %v425_v34 = vpop.xlane.xlu1 %424 }
  0xb4   : > { %v429_v36 = vmul.f32 %v417_v31, %v417_v31  ;;  %v427_v37 = vmul.f32 %v425_v34, %v415_v16  ;;  %v433_v56 = vsub.f32 %v2670_v3, %v417_v31 }
  0xb6   : > { %v431_v38 = vsub.f32 %v427_v37, %v429_v36 }
  0xb8   : > { %v2197_v39 = vpop.eup %2196  ;;  %v435_v40 = vadd.f32 1e-05, %v431_v38 }
  0xb9   : > { %v437_v41 = vmul.f32 %v2197_v39, %v434_v29  ;;  %vm443_vm2 = vweird.f32 %v2197_v39 }
  0xba   : > { %2198 = vrsqrt.f32 %v435_v40  ;;  %vm444_vm4 = vmor %vm442_vm3, %vm443_vm2  ;;  %vm452_vm6 = vweird.f32 %v435_v40 }
  0xbb   : > { %v438_v42 = vmul.f32 %v2197_v39, %v437_v41 }
  0xbc   : > { %v695_v1 = vpop.f32.mrf.mxu1 }
  0xbd   : > { %v439_v43 = vmul.f32 0.5, %v438_v42 }
  0xbf   : > { %v440_v44 = vsub.f32 1.5, %v439_v43 }
  0xc0   : > { %v2199_v45 = vpop.eup %2198 }
  0xc1   : > { %v441_v46 = vmul.f32 %v2197_v39, %v440_v44  ;;  %v447_v47 = vmul.f32 %v2199_v45, %v435_v40  ;;  %vm453_vm5 = vweird.f32 %v2199_v45 }
  0xc2   : > { %vm454_vm7 = vmor %vm452_vm6, %vm453_vm5 }
  0xc3   : > { %v448_v48 = vmul.f32 %v2199_v45, %v447_v47  ;;  %v445_v49 = vsel %vm444_vm4, %v2197_v39, %v441_v46 }
  0xc4   : > { %v456_v53 = vmul.f32 %v445_v49, %v432_v51  ;;  %v697_v2 = vpop.f32.mrf.mxu1 }
  0xc5   : > { %v449_v50 = vmul.f32 0.5, %v448_v48  ;;  %v700_v4 = vpack.c.bf16 %v697_v2, %v695_v1 }
  0xc6   : > { %v462_v59 = vmul.f32 %v2192_v54, %v456_v53 }
  0xc7   : > { %v450_v52 = vsub.f32 1.5, %v449_v50  ;;  %v783_v3 = vsel %vm630_vm8, %v700_v4, 0 }
  0xc8   : > { %v468_v62 = vadd.f32 %v2193_v60, %v462_v59  ;;  %792 = vmatpush.bf16.xpose.msrb.mxu1 %v783_v3  ;;  %2011 = vmatpush.bf16.xpose.msra.mxu2 %v783_v3 }
  0xc9   : > { %v451_v55 = vmul.f32 %v2199_v45, %v450_v52 }
  0xcb   : > { %v455_v57 = vsel %vm454_vm7, %v2199_v45, %v451_v55 }
  0xcc   : > { %v457_v58 = vmul.f32 %v455_v57, %v433_v56 }
  0xce   : > { %v463_v61 = vmul.f32 %v2192_v54, %v457_v58  ;;  %v2488_v58 = vmov -inf  }
  0xcf   : > { %598 = vst.msk [vmem:[#allocation3] sm:$0xff] %vm597_vm11, %v2488_v58 }
  0xd0   : > { %v469_v63 = vadd.f32 %v2193_v60, %v463_v61  ;;  %599 = vst.msk [vmem:[#allocation3 + $0x8] sm:$0xff] %vm597_vm11, %v2488_v58  ;;  %v2489_v61 = vmov 0.0  }
  0xd1   : > { %600 = vst.msk [vmem:[#allocation3 + $0x10] sm:$0xff] %vm597_vm11, %v2488_v58 }
  0xd2   : > { %v470_v0 = vpack.c.bf16 %v469_v63, %v468_v62  ;;  %601 = vst.msk [vmem:[#allocation3 + $0x18] sm:$0xff] %vm597_vm11, %v2488_v58 }
  0xd3   : > { %602 = vst.msk [vmem:[#allocation3 + $0x20] sm:$0xff] %vm597_vm11, %v2488_v58 }
  0xd4   : > { %1900 = vmatmul.msk.bf16.vlgmr.msra.gmra.mxu0 %vm402_vm0, %v470_v0  ;;  %603 = vst.msk [vmem:[#allocation3 + $0x28] sm:$0xff] %vm597_vm11, %v2488_v58 }
  0xd5   : > { %604 = vst.msk [vmem:[#allocation3 + $0x30] sm:$0xff] %vm597_vm11, %v2488_v58 }
  0xd6   : > { %605 = vst.msk [vmem:[#allocation3 + $0x38] sm:$0xff] %vm597_vm11, %v2488_v58  ;;  %v2776_v0 = vld [vmem:[#allocation3] sm:$0xff] }
  0xd7   : > { %606 = vst.msk [vmem:[#allocation3 + $0x40] sm:$0xff] %vm597_vm11, %v2488_v58 }
  0xd8   : > { %607 = vst.msk [vmem:[#allocation3 + $0x48] sm:$0xff] %vm597_vm11, %v2488_v58 }
  0xd9   : > { %608 = vst.msk [vmem:[#allocation3 + $0x50] sm:$0xff] %vm597_vm11, %v2488_v58 }
  0xda   : > { %609 = vst.msk [vmem:[#allocation3 + $0x58] sm:$0xff] %vm597_vm11, %v2488_v58 }
  0xdb   : > { %610 = vst.msk [vmem:[#allocation3 + $0x60] sm:$0xff] %vm597_vm11, %v2488_v58 }
  0xdc   : > { %611 = vst.msk [vmem:[#allocation3 + $0x68] sm:$0xff] %vm597_vm11, %v2488_v58 }
  0xdd   : > { %612 = vst.msk [vmem:[#allocation3 + $0x70] sm:$0xff] %vm597_vm11, %v2488_v58 }
  0xde   : > { %613 = vst.msk [vmem:[#allocation3 + $0x78] sm:$0xff] %vm597_vm11, %v2488_v58 }
  0xdf   : > { %633 = vst.msk [vmem:[#allocation5 + $0x10] sm:$0xff] %vm630_vm8, %v2489_v61 }
  0xe0   : > { %614 = vst.msk [vmem:[#allocation4] sm:$0xff] %vm597_vm11, %v2489_v61 }
  0xe1   : > { %615 = vst.msk [vmem:[#allocation4 + $0x8] sm:$0xff] %vm597_vm11, %v2489_v61 }
  0xe2   : > { %616 = vst.msk [vmem:[#allocation4 + $0x10] sm:$0xff] %vm597_vm11, %v2489_v61 }
  0xe3   : > { %617 = vst.msk [vmem:[#allocation4 + $0x18] sm:$0xff] %vm597_vm11, %v2489_v61 }
  0xe4   : > { %618 = vst.msk [vmem:[#allocation4 + $0x20] sm:$0xff] %vm597_vm11, %v2489_v61 }
  0xe5   : > { %619 = vst.msk [vmem:[#allocation4 + $0x28] sm:$0xff] %vm597_vm11, %v2489_v61 }
  0xe6   : > { %620 = vst.msk [vmem:[#allocation4 + $0x30] sm:$0xff] %vm597_vm11, %v2489_v61 }
  0xe7   : > { %621 = vst.msk [vmem:[#allocation4 + $0x38] sm:$0xff] %vm597_vm11, %v2489_v61 }
  0xe8   : > { %622 = vst.msk [vmem:[#allocation4 + $0x40] sm:$0xff] %vm597_vm11, %v2489_v61 }
  0xe9   : > { %623 = vst.msk [vmem:[#allocation4 + $0x48] sm:$0xff] %vm597_vm11, %v2489_v61 }
  0xea   : > { %624 = vst.msk [vmem:[#allocation4 + $0x50] sm:$0xff] %vm597_vm11, %v2489_v61 }
  0xeb   : > { %625 = vst.msk [vmem:[#allocation4 + $0x58] sm:$0xff] %vm597_vm11, %v2489_v61 }
  0xec   : > { %626 = vst.msk [vmem:[#allocation4 + $0x60] sm:$0xff] %vm597_vm11, %v2489_v61 }
  0xed   : > { %627 = vst.msk [vmem:[#allocation4 + $0x68] sm:$0xff] %vm597_vm11, %v2489_v61 }
  0xee   : > { %628 = vst.msk [vmem:[#allocation4 + $0x70] sm:$0xff] %vm597_vm11, %v2489_v61 }
  0xef   : > { %629 = vst.msk [vmem:[#allocation4 + $0x78] sm:$0xff] %vm597_vm11, %v2489_v61 }
  0xf0   : > { %631 = vst.msk [vmem:[#allocation5] sm:$0xff] %vm630_vm8, %v2489_v61 }
  0xf1   : > { %632 = vst.msk [vmem:[#allocation5 + $0x8] sm:$0xff] %vm630_vm8, %v2489_v61 }
  0xf2   : > { %634 = vst.msk [vmem:[#allocation5 + $0x18] sm:$0xff] %vm630_vm8, %v2489_v61 }
  0xf3   : > { %635 = vst.msk [vmem:[#allocation5 + $0x20] sm:$0xff] %vm630_vm8, %v2489_v61 }
  0xf4   : > { %636 = vst.msk [vmem:[#allocation5 + $0x28] sm:$0xff] %vm630_vm8, %v2489_v61 }
  0xf5   : > { %637 = vst.msk [vmem:[#allocation5 + $0x30] sm:$0xff] %vm630_vm8, %v2489_v61 }
  0xf6   : > { %638 = vst.msk [vmem:[#allocation5 + $0x38] sm:$0xff] %vm630_vm8, %v2489_v61 }
  0xf7   : > { %639 = vst.msk [vmem:[#allocation5 + $0x40] sm:$0xff] %vm630_vm8, %v2489_v61 }
  0xf8   : > { %640 = vst.msk [vmem:[#allocation5 + $0x48] sm:$0xff] %vm630_vm8, %v2489_v61 }
  0xf9   : > { %641 = vst.msk [vmem:[#allocation5 + $0x50] sm:$0xff] %vm630_vm8, %v2489_v61 }
  0xfa   : > { %642 = vst.msk [vmem:[#allocation5 + $0x58] sm:$0xff] %vm630_vm8, %v2489_v61 }
  0xfb   : > { %643 = vst.msk [vmem:[#allocation5 + $0x60] sm:$0xff] %vm630_vm8, %v2489_v61 }
  0xfc   : > { %644 = vst.msk [vmem:[#allocation5 + $0x68] sm:$0xff] %vm630_vm8, %v2489_v61 }
  0xfd   : > { %645 = vst.msk [vmem:[#allocation5 + $0x70] sm:$0xff] %vm630_vm8, %v2489_v61 }
  0xfe   : > { %646 = vst.msk [vmem:[#allocation5 + $0x78] sm:$0xff] %vm630_vm8, %v2489_v61  ;;  %v2914_v61 = vld [vmem:[#allocation3 + $0x50] sm:$0xff] }
 0x151   : > { %v515_v5 = vpop.f32.mrf.mxu0 }
 0x152   : > { %v564_v6 = vpack.c.bf16 %v515_v5, %v515_v5 }
 0x154   : > { %581 = vst.msk [vmem:[#allocation2] sm:$0xf] %vm580_vm9, %v564_v6 }
 0x159   : > { %v517_v7 = vpop.f32.mrf.mxu0 }
 0x15a   : > { %v565_v8 = vpack.c.bf16 %v517_v7, %v517_v7  ;;  %v2134_v9 = vpack.i.bf16 %v517_v7, %v515_v5 }
 0x15c   : > { %582 = vst.msk [vmem:[#allocation2 + $0x4] sm:$0xf] %vm580_vm9, %v565_v8  ;;  %2135 = vrot.lane.b32.xlu1 %v2134_v9, %s2481_s24  ;;  %2130 = vrot.lane.b32.xlu0 %v2134_v9, %s2482_s12 }
 0x15d   : > { %2120 = vrot.lane.b32.xlu2 %v2134_v9, %s2483_s16 }
 0x163   : > { %v1998_v10 = vld [vmem:[#allocation2] sm:$0xff] }
 0x164   : > { %1325 = vrot.lane.b32.xlu1 %v700_v4, %s2483_s16  ;;  %1950 = vmatmul.msk.bf16.vlgmr.msrb.gmra.mxu1 %vm630_vm8, %v1998_v10  ;;  %v2790_v4 = vld [vmem:[#allocation3 + $0x8] sm:$0xff]  ;;  %s1737_s16 = scalar_lea.hbm %s3255_s7, %s2010_s17 }
 0x165   : > { %2125 = vrot.lane.b32.xlu2 %v2134_v9, %s2484_s13  ;;  %s1738_s13 = sshll.u32 %s382_s4, 4  ;;  %s1739_s13 = int_to_ptr.vmem [resolvable:$true] %s1738_s13 }
 0x16d   : > { %2140 = vrot.lane.b32.xlu2 %v2134_v9, %s2485_s9  ;;  %s1740_s9 = sshll.u32 %s1737_s16, 4  ;;  %s1741_s9 = int_to_ptr.hbm [resolvable:$true] %s1740_s9 }
 0x175   : > { %2145 = vrot.lane.b32.xlu2 %v2134_v9, %s2486_s11  ;;  %s1724_s11 = scalar_lea.sflag [#allocation8], %s2643_s14 }
 0x17d   : > { %2150 = vrot.lane.b32.xlu2 %v2134_v9, %s2487_s19  ;;  %s2400_s19 = sshra.s32 %s1741_s9, 4  ;;  %s2401_s19 = int_to_ptr.hbm [resolvable:$true] %s2400_s19 }
 0x17e   : > { %s2402_s27 = scalar_lea.hbm %s2401_s19, 16  ;;  %p2407_p12 = scmp.lt.s32.totalorder %s2401_s19, %s3255_s7 }
 0x17f   : > { %p2403_p1 = scmp.ne.s32.totalorder %s2401_s19, %s2402_s27 }
 0x181   : > { %p2404_p4 = pnand %p2403_p1, %p2622_p7 }
 0x183   : > { %p2405_p10 = pneg %p2404_p4 }
 0x1b7   : > { %v2121_v11 = vpop.permute.xlu2 %2120 }
 0x1b8   : > { %v2123_v12 = vunpack.i.h.bf16 %v2121_v11  ;;  %v2122_v13 = vunpack.i.l.bf16 %v2121_v11 }
 0x1ba   : > { %v567_v14 = vpack.c.bf16 %v2123_v12, %v2123_v12  ;;  %v566_v15 = vpack.c.bf16 %v2122_v13, %v2122_v13 }
 0x1bc   : > { %584 = vst.msk [vmem:[#allocation2 + $0xc] sm:$0xf] %vm580_vm9, %v567_v14 }
 0x1bd   : > { %583 = vst.msk [vmem:[#allocation2 + $0x8] sm:$0xf] %vm580_vm9, %v566_v15 }
 0x1bf   : > { %v2126_v16 = vpop.permute.xlu2 %2125 }
 0x1c0   : > { %v2128_v17 = vunpack.i.h.bf16 %v2126_v16  ;;  %v2127_v18 = vunpack.i.l.bf16 %v2126_v16 }
 0x1c2   : > { %v569_v19 = vpack.c.bf16 %v2128_v17, %v2128_v17  ;;  %v568_v20 = vpack.c.bf16 %v2127_v18, %v2127_v18 }
 0x1c4   : > { %586 = vst.msk [vmem:[#allocation2 + $0x14] sm:$0xf] %vm580_vm9, %v569_v19  ;;  %v1999_v21 = vld [vmem:[#allocation2 + $0x8] sm:$0xff] }
 0x1c5   : > { %585 = vst.msk [vmem:[#allocation2 + $0x10] sm:$0xf] %vm580_vm9, %v568_v20  ;;  %1951 = vmatmul.msk.bf16.gmra.mxu1 %vm630_vm8, %v1999_v21 }
 0x1c7   : > { %v2141_v22 = vpop.permute.xlu2 %2140 }
 0x1c8   : > { %v2143_v23 = vunpack.i.h.bf16 %v2141_v22  ;;  %v2142_v24 = vunpack.i.l.bf16 %v2141_v22 }
 0x1ca   : > { %v575_v25 = vpack.c.bf16 %v2143_v23, %v2143_v23  ;;  %v574_v26 = vpack.c.bf16 %v2142_v24, %v2142_v24 }
 0x1cc   : > { %592 = vst.msk [vmem:[#allocation2 + $0x2c] sm:$0xf] %vm580_vm9, %v575_v25  ;;  %v2000_v42 = vld [vmem:[#allocation2 + $0x10] sm:$0xff] }
 0x1cd   : > { %591 = vst.msk [vmem:[#allocation2 + $0x28] sm:$0xf] %vm580_vm9, %v574_v26 }
 0x1ce   : > { %v2136_v27 = vpop.permute.xlu1 %2135  ;;  %v2131_v28 = vpop.permute.xlu0 %2130 }
 0x1cf   : > { %v2138_v29 = vunpack.i.h.bf16 %v2136_v27  ;;  %v2137_v30 = vunpack.i.l.bf16 %v2136_v27  ;;  %v2133_v31 = vunpack.i.h.bf16 %v2131_v28  ;;  %v2132_v32 = vunpack.i.l.bf16 %v2131_v28  ;;  %v2146_v33 = vpop.permute.xlu2 %2145  ;;  %v2849_v28 = vld [vmem:[#allocation3 + $0x10] sm:$0xff] }
 0x1d0   : > { %v2148_v34 = vunpack.i.h.bf16 %v2146_v33  ;;  %v2147_v35 = vunpack.i.l.bf16 %v2146_v33 }
 0x1d1   : > { %v573_v36 = vpack.c.bf16 %v2138_v29, %v2138_v29  ;;  %v572_v37 = vpack.c.bf16 %v2137_v30, %v2137_v30  ;;  %v571_v38 = vpack.c.bf16 %v2133_v31, %v2133_v31  ;;  %v570_v39 = vpack.c.bf16 %v2132_v32, %v2132_v32  ;;  %v2856_v32 = vld [vmem:[#allocation3 + $0x18] sm:$0xff] }
 0x1d2   : > { %v577_v40 = vpack.c.bf16 %v2148_v34, %v2148_v34  ;;  %v576_v41 = vpack.c.bf16 %v2147_v35, %v2147_v35  ;;  %v2490_v31 = vmov 0   ;;  %v2863_v35 = vld [vmem:[#allocation3 + $0x30] sm:$0xff] }
 0x1d3   : > { %590 = vst.msk [vmem:[#allocation2 + $0x24] sm:$0xf] %vm580_vm9, %v573_v36  ;;  %2154 = vset.pattern.permute.xlu2 %v2490_v31  ;;  %2155 = vset.pattern.permute.xlu0 %v2490_v31 }
 0x1d4   : > { %589 = vst.msk [vmem:[#allocation2 + $0x20] sm:$0xf] %vm580_vm9, %v572_v37  ;;  %v2003_v54 = vld [vmem:[#allocation2 + $0x28] sm:$0xff]  ;;  %2156 = vset.pattern.permute.xlu1 %v2490_v31  ;;  %v2952_v31 = vld [vmem:[#allocation3 + $0x70] sm:$0xff] }
 0x1d5   : > { %588 = vst.msk [vmem:[#allocation2 + $0x1c] sm:$0xf] %vm580_vm9, %v571_v38  ;;  %1952 = vmatmul.msk.bf16.gmra.mxu1 %vm630_vm8, %v2000_v42 }
 0x1d6   : > { %587 = vst.msk [vmem:[#allocation2 + $0x18] sm:$0xf] %vm580_vm9, %v570_v39  ;;  %v1326_v55 = vpop.permute.xlu1 %1325  ;;  %v2873_v39 = vld [vmem:[#allocation3 + $0x38] sm:$0xff] }
 0x1d7   : > { %594 = vst.msk [vmem:[#allocation2 + $0x34] sm:$0xf] %vm580_vm9, %v577_v40  ;;  %v2151_v43 = vpop.permute.xlu2 %2150  ;;  %1359 = vmatpush.bf16.msrb.mxu0 %v1326_v55  ;;  %2012 = vmatpush.bf16.msra.mxu3 %v1326_v55 }
 0x1d8   : > { %593 = vst.msk [vmem:[#allocation2 + $0x30] sm:$0xf] %vm580_vm9, %v576_v41  ;;  %v2153_v44 = vunpack.i.h.bf16 %v2151_v43  ;;  %v2152_v45 = vunpack.i.l.bf16 %v2151_v43  ;;  %v2883_v43 = vld [vmem:[#allocation3 + $0x40] sm:$0xff] }
 0x1da   : > { %v579_v46 = vpack.c.bf16 %v2153_v44, %v2153_v44  ;;  %v578_v47 = vpack.c.bf16 %v2152_v45, %v2152_v45  ;;  %v2885_v44 = vld [vmem:[#allocation3 + $0x20] sm:$0xff] }
 0x1db   : > { %v2002_v53 = vld [vmem:[#allocation2 + $0x20] sm:$0xff] }
 0x1dc   : > { %596 = vst.msk [vmem:[#allocation2 + $0x3c] sm:$0xf] %vm580_vm9, %v579_v46 }
 0x1dd   : > { %595 = vst.msk [vmem:[#allocation2 + $0x38] sm:$0xf] %vm580_vm9, %v578_v47  ;;  %v2001_v48 = vld [vmem:[#allocation2 + $0x18] sm:$0xff] }
 0x1de   : > { %1953 = vmatmul.msk.bf16.vlgmr.msra.gmra.mxu2 %vm630_vm8, %v2001_v48 }
 0x1df   : > { %v2004_v56 = vld [vmem:[#allocation2 + $0x30] sm:$0xff] }
 0x1e1   : > { %v2723_v49 = vpop.f32.mrf.mxu1 }
 0x1e2   : > { %v851_v50 = vsel %vm850_vm10, %v2723_v49, -inf }
 0x1e3   : > { %852 = vmax.xlane.f32.xlu0 %v851_v50 }
 0x1e4   : > { %v2005_v57 = vld [vmem:[#allocation2 + $0x38] sm:$0xff] }
 0x1e9   : > { %v2727_v51 = vpop.f32.mrf.mxu1 }
 0x1ea   : > { %v854_v52 = vsel %vm850_vm10, %v2727_v51, -inf }
 0x1eb   : > { %855 = vmax.xlane.f32.xlu2 %v854_v52 }
 0x1ee   : > { %1954 = vmatmul.msk.bf16.gmra.mxu2 %vm630_vm8, %v2002_v53  ;;  %v843_v53 = vld [vmem:[#allocation3 + $0x48] sm:$0xff] }
 0x1fe   : > { %1955 = vmatmul.msk.bf16.gmra.mxu2 %vm630_vm8, %v2003_v54  ;;  %v2903_v54 = vld [vmem:[#allocation3 + $0x28] sm:$0xff] }
 0x20e   : > { %1956 = vmatmul.msk.bf16.gmra.mxu2 %vm630_vm8, %v2004_v56 }
 0x21e   : > { %1957 = vmatmul.msk.bf16.gmra.mxu2 %vm630_vm8, %v2005_v57 }
 0x242   : > { %v2750_v59 = vpop.f32.mrf.mxu1 }
 0x243   : > { %v857_v60 = vsel %vm850_vm10, %v2750_v59, -inf }
 0x244   : > { %858 = vmax.xlane.f32.xlu0 %v857_v60 }
 0x24a   : > { %v2762_v62 = vpop.f32.mrf.mxu1 }
 0x24b   : > { %v860_v63 = vsel %vm850_vm10, %v2762_v62, -inf }
 0x24c   : > { %861 = vmax.xlane.f32.xlu0 %v860_v63 }
 0x252   : > { %v2813_v10 = vpop.f32.mrf.mxu1 }
 0x253   : > { %v863_v13 = vsel %vm850_vm10, %v2813_v10, -inf }
 0x256   : > { %v853_v1 = vpop.xlane.xlu0 %852 }
 0x257   : > { %v2782_v2 = vmax.f32 %v2776_v0, %v853_v1 }
 0x259   : > { %1433 = vst.msk [vmem:[#allocation3] sm:$0xff] %vm597_vm11, %v2782_v2 }
 0x25a   : > { %v2821_v14 = vpop.f32.mrf.mxu1 }
 0x25b   : > { %v866_v17 = vsel %vm850_vm10, %v2821_v14, -inf }
 0x25e   : > { %v856_v3 = vpop.xlane.xlu2 %855 }
 0x25f   : > { %v2796_v5 = vmax.f32 %v2790_v4, %v856_v3 }
 0x261   : > { %v2800_v6 = vpop.f32.mrf.mxu2  ;;  %1434 = vst.msk [vmem:[#allocation3 + $0x8] sm:$0xff] %vm597_vm11, %v2796_v5 }
 0x262   : > { %v869_v7 = vsel %vm850_vm10, %v2800_v6, -inf }
 0x263   : > { %870 = vmax.xlane.f32.xlu1 %v869_v7  ;;  %v2924_v7 = vld [vmem:[#allocation3 + $0x58] sm:$0xff] }
 0x269   : > { %v2809_v8 = vpop.f32.mrf.mxu2 }
 0x26a   : > { %v872_v9 = vsel %vm850_vm10, %v2809_v8, -inf }
 0x26b   : > { %873 = vmax.xlane.f32.xlu0 %v872_v9 }
 0x271   : > { %v2815_v11 = vpop.f32.mrf.mxu2 }
 0x272   : > { %v875_v12 = vsel %vm850_vm10, %v2815_v11, -inf }
 0x273   : > { %876 = vmax.xlane.f32.xlu2 %v875_v12  ;;  %864 = vmax.xlane.f32.xlu0 %v863_v13 }
 0x279   : > { %v2823_v15 = vpop.f32.mrf.mxu2 }
 0x27a   : > { %v878_v16 = vsel %vm850_vm10, %v2823_v15, -inf }
 0x27b   : > { %879 = vmax.xlane.f32.xlu1 %v878_v16  ;;  %867 = vmax.xlane.f32.xlu2 %v866_v17  ;;  %v846_v16 = vld [vmem:[#allocation3 + $0x60] sm:$0xff] }
 0x281   : > { %v2829_v18 = vpop.f32.mrf.mxu2 }
 0x282   : > { %v881_v19 = vsel %vm850_vm10, %v2829_v18, -inf }
 0x283   : > { %882 = vmax.xlane.f32.xlu1 %v881_v19 }
 0x289   : > { %v2833_v20 = vpop.f32.mrf.mxu2 }
 0x28a   : > { %v884_v21 = vsel %vm850_vm10, %v2833_v20, -inf }
 0x28b   : > { %885 = vmax.xlane.f32.xlu1 %v884_v21  ;;  %v2940_v21 = vld [vmem:[#allocation3 + $0x68] sm:$0xff] }
 0x291   : > { %v2837_v22 = vpop.f32.mrf.mxu2 }
 0x292   : > { %v887_v23 = vsel %vm850_vm10, %v2837_v22, -inf }
 0x293   : > { %888 = vmax.xlane.f32.xlu1 %v887_v23 }
 0x299   : > { %v2841_v24 = vpop.f32.mrf.mxu2 }
 0x29a   : > { %v890_v25 = vsel %vm850_vm10, %v2841_v24, -inf }
 0x29b   : > { %891 = vmax.xlane.f32.xlu0 %v890_v25 }
 0x2a1   : > { %v2845_v26 = vpop.f32.mrf.mxu2 }
 0x2a2   : > { %v893_v27 = vsel %vm850_vm10, %v2845_v26, -inf }
 0x2a3   : > { %894 = vmax.xlane.f32.xlu0 %v893_v27 }
 0x2b7   : > { %v859_v29 = vpop.xlane.xlu0 %858 }
 0x2b8   : > { %v2852_v30 = vmax.f32 %v2849_v28, %v859_v29 }
 0x2ba   : > { %1435 = vst.msk [vmem:[#allocation3 + $0x10] sm:$0xff] %vm597_vm11, %v2852_v30  ;;  %v917_v29 = vsub.f32 %v2849_v28, %v2852_v30 }
 0x2bf   : > { %v862_v33 = vpop.xlane.xlu0 %861 }
 0x2c0   : > { %v2859_v34 = vmax.f32 %v2856_v32, %v862_v33  ;;  %v2954_v33 = vpop.f32.mrf.mxu2 }
 0x2c1   : > { %v896_v28 = vsel %vm850_vm10, %v2954_v33, -inf }
 0x2c2   : > { %1436 = vst.msk [vmem:[#allocation3 + $0x18] sm:$0xff] %vm597_vm11, %v2859_v34 }
 0x2d6   : > { %v871_v36 = vpop.xlane.xlu1 %870 }
 0x2d7   : > { %v2866_v37 = vmax.f32 %v2863_v35, %v871_v36  ;;  %v935_v36 = vmul.f32 1.442695, %v917_v29 }
 0x2d9   : > { %v921_v38 = vsub.f32 %v2863_v35, %v2866_v37  ;;  %1439 = vst.msk [vmem:[#allocation3 + $0x30] sm:$0xff] %vm597_vm11, %v2866_v37  ;;  %995 = vperm.xlu2 %2154, %v2866_v37   ;;  %2200 = vpow2.f32 %v935_v36 }
 0x2de   : > { %v874_v40 = vpop.xlane.xlu0 %873 }
 0x2df   : > { %v2876_v41 = vmax.f32 %v2873_v39, %v874_v40 }
 0x2e1   : > { %v922_v42 = vsub.f32 %v2873_v39, %v2876_v41  ;;  %1440 = vst.msk [vmem:[#allocation3 + $0x38] sm:$0xff] %vm597_vm11, %v2876_v41  ;;  %1000 = vperm.xlu2 %2154, %v2876_v41  }
 0x2e6   : > { %v877_v45 = vpop.xlane.xlu2 %876  ;;  %v865_v46 = vpop.xlane.xlu0 %864 }
 0x2e7   : > { %v2888_v47 = vmax.f32 %v2883_v43, %v877_v45  ;;  %v2891_v48 = vmax.f32 %v2885_v44, %v865_v46 }
 0x2e9   : > { %1441 = vst.msk [vmem:[#allocation3 + $0x40] sm:$0xff] %vm597_vm11, %v2888_v47  ;;  %v919_v52 = vsub.f32 %v2885_v44, %v2891_v48  ;;  %985 = vperm.xlu0 %2155, %v2891_v48   ;;  %1005 = vperm.xlu2 %2154, %v2888_v47  }
 0x2ea   : > { %1437 = vst.msk [vmem:[#allocation3 + $0x20] sm:$0xff] %vm597_vm11, %v2891_v48 }
 0x2ee   : > { %v880_v55 = vpop.xlane.xlu1 %879  ;;  %v868_v56 = vpop.xlane.xlu2 %867 }
 0x2ef   : > { %v908_v57 = vmax.f32 %v843_v53, %v880_v55  ;;  %v2906_v58 = vmax.f32 %v2903_v54, %v868_v56  ;;  %v943_v55 = vmul.f32 1.442695, %v921_v38  ;;  %v2969_v56 = vpop.eup %2200 }
 0x2f1   : > { %1442 = vst.msk [vmem:[#allocation3 + $0x48] sm:$0xff] %vm597_vm11, %v908_v57  ;;  %v920_v60 = vsub.f32 %v2903_v54, %v2906_v58  ;;  %1010 = vperm.xlu1 %2156, %v908_v57   ;;  %990 = vperm.xlu2 %2154, %v2906_v58   ;;  %2202 = vpow2.f32 %v943_v55 }
 0x2f2   : > { %1438 = vst.msk [vmem:[#allocation3 + $0x28] sm:$0xff] %vm597_vm11, %v2906_v58 }
 0x2f6   : > { %v883_v63 = vpop.xlane.xlu1 %882 }
 0x2f7   : > { %v2917_v1 = vmax.f32 %v2914_v61, %v883_v63  ;;  %v924_v63 = vsub.f32 %v843_v53, %v908_v57 }
 0x2f9   : > { %v925_v3 = vsub.f32 %v2914_v61, %v2917_v1  ;;  %1443 = vst.msk [vmem:[#allocation3 + $0x50] sm:$0xff] %vm597_vm11, %v2917_v1  ;;  %965 = vperm.xlu1 %2156, %v2782_v2  }
 0x2fb   : > { %v951_v39 = vmul.f32 1.442695, %v925_v3 }
 0x2fe   : > { %v886_v9 = vpop.xlane.xlu1 %885 }
 0x2ff   : > { %v2927_v12 = vmax.f32 %v2924_v7, %v886_v9  ;;  %v949_v9 = vmul.f32 1.442695, %v924_v63 }
 0x301   : > { %1444 = vst.msk [vmem:[#allocation3 + $0x58] sm:$0xff] %vm597_vm11, %v2927_v12  ;;  %1015 = vperm.xlu1 %2156, %v2917_v1   ;;  %1020 = vperm.xlu0 %2155, %v2927_v12   ;;  %2204 = vpow2.f32 %v949_v9  ;;  %v3274_v44 = vsub.f32 %v2924_v7, %v2927_v12 }
 0x303   : > { %v953_v48 = vmul.f32 1.442695, %v3274_v44 }
 0x306   : > { %v889_v17 = vpop.xlane.xlu1 %888 }
 0x307   : > { %v2935_v19 = vmax.f32 %v846_v16, %v889_v17  ;;  %v2972_v17 = vpop.eup %2202 }
 0x308   : > { %v2976_v36 = vpop.eup %2204 }
 0x309   : > { %1445 = vst.msk [vmem:[#allocation3 + $0x60] sm:$0xff] %vm597_vm11, %v2935_v19  ;;  %970 = vperm.xlu1 %2156, %v2796_v5  }
 0x30e   : > { %v892_v23 = vpop.xlane.xlu0 %891 }
 0x30f   : > { %v2943_v25 = vmax.f32 %v2940_v21, %v892_v23  ;;  %v927_v23 = vsub.f32 %v846_v16, %v2935_v19 }
 0x311   : > { %v928_v27 = vsub.f32 %v2940_v21, %v2943_v25  ;;  %1446 = vst.msk [vmem:[#allocation3 + $0x68] sm:$0xff] %vm597_vm11, %v2943_v25  ;;  %1030 = vperm.xlu1 %2156, %v2943_v25   ;;  %v955_v29 = vmul.f32 1.442695, %v927_v23 }
 0x313   : > { %2206 = vpow2.f32 %v955_v29  ;;  %v957_v61 = vmul.f32 1.442695, %v928_v27 }
 0x316   : > { %v895_v40 = vpop.xlane.xlu0 %894 }
 0x317   : > { %v2957_v45 = vmax.f32 %v2952_v31, %v895_v40 }
 0x319   : > { %1447 = vst.msk [vmem:[#allocation3 + $0x70] sm:$0xff] %vm597_vm11, %v2957_v45  ;;  %980 = vperm.xlu1 %2156, %v2859_v34   ;;  %v2980_v37 = vpop.eup %2206  ;;  %v3275_v54 = vsub.f32 %v2952_v31, %v2957_v45 }
 0x31a   : > { %897 = vmax.xlane.f32.xlu2 %v896_v28 }
 0x31b   : > { %v959_v58 = vmul.f32 1.442695, %v3275_v54 }
 0x321   : > { %1232 = vperm.xlu1 %2156, %v2969_v56  }
 0x329   : > { %1252 = vperm.xlu1 %2156, %v2972_v17  }
 0x331   : > { %1267 = vperm.xlu1 %2156, %v2976_v36  }
 0x332   : > { %1035 = vperm.xlu2 %2154, %v2957_v45   ;;  %v915_v45 = vsub.f32 %v2776_v0, %v2782_v2 }
 0x333   : > { %v996_v35 = vpop.permute.xlu2 %995 }
 0x334   : > { %v1049_v13 = vsub.f32 %v2800_v6, %v996_v35 }
 0x339   : > { %1282 = vperm.xlu1 %2156, %v2980_v37  }
 0x33b   : > { %v1001_v38 = vpop.permute.xlu2 %1000 }
 0x33c   : > { %v1050_v46 = vsub.f32 %v2809_v8, %v1001_v38 }
 0x343   : > { %v1006_v53 = vpop.permute.xlu2 %1005 }
 0x344   : > { %v1051_v38 = vsub.f32 %v2815_v11, %v1006_v53  ;;  %v918_v11 = vsub.f32 %v2856_v32, %v2859_v34 }
 0x34b   : > { %v991_v57 = vpop.permute.xlu2 %990 }
 0x34c   : > { %v1048_v40 = vsub.f32 %v2821_v14, %v991_v57  ;;  %v1073_v14 = vmul.f32 1.442695, %v1050_v46  ;;  %v1071_v57 = vmul.f32 1.442695, %v1049_v13  ;;  %v1075_v46 = vmul.f32 1.442695, %v1051_v38 }
 0x34e   : > { %v1069_v28 = vmul.f32 1.442695, %v1048_v40 }
 0x350   : > { %2208 = vpow2.f32 %v1069_v28 }
 0x356   : > { %v2985_v23 = vpop.eup %2208 }
 0x35b   : > { %v986_v16 = vpop.permute.xlu0 %985 }
 0x35c   : > { %v1047_v55 = vsub.f32 %v2813_v10, %v986_v16 }
 0x35e   : > { %v1067_v63 = vmul.f32 1.442695, %v1047_v55 }
 0x360   : > { %2210 = vpow2.f32 %v1067_v63 }
 0x361   : > { %2212 = vpow2.f32 %v1073_v14 }
 0x362   : > { %2214 = vpow2.f32 %v1071_v57 }
 0x363   : > { %v1011_v9 = vpop.permute.xlu1 %1010 }
 0x364   : > { %v1052_v35 = vsub.f32 %v2823_v15, %v1011_v9 }
 0x366   : > { %v2987_v29 = vpop.eup %2210 }
 0x367   : > { %v1318_v50 = vpack.c.bf16 %v2985_v23, %v2987_v29  ;;  %v2995_v55 = vpop.eup %2212  ;;  %v1135_v7 = vsel %vm850_vm10, %v2987_v29, 0.0 }
 0x368   : > { %v2997_v8 = vpop.eup %2214 }
 0x369   : > { %1960 = vmatmul.msk.bf16.vlgmr.msra.gmra.mxu3 %vm850_vm10, %v1318_v50  ;;  %v1319_v13 = vpack.c.bf16 %v2995_v55, %v2997_v8 }
 0x36b   : > { %v966_v10 = vpop.permute.xlu1 %965 }
 0x36c   : > { %v1043_v40 = vsub.f32 %v2723_v49, %v966_v10  ;;  %v1077_v49 = vmul.f32 1.442695, %v1052_v35  ;;  %v937_v10 = vmul.f32 1.442695, %v918_v11  ;;  %v939_v11 = vmul.f32 1.442695, %v919_v52 }
 0x36e   : > { %v1059_v28 = vmul.f32 1.442695, %v1043_v40 }
 0x370   : > { %2216 = vpow2.f32 %v1059_v28 }
 0x371   : > { %2218 = vpow2.f32 %v1077_v49 }
 0x372   : > { %2220 = vpow2.f32 %v1075_v46 }
 0x373   : > { %v1016_v16 = vpop.permute.xlu1 %1015  ;;  %v1021_v15 = vpop.permute.xlu0 %1020 }
 0x374   : > { %v1053_v40 = vsub.f32 %v2829_v18, %v1016_v16  ;;  %v1054_v35 = vsub.f32 %v2833_v20, %v1021_v15  ;;  %v945_v18 = vmul.f32 1.442695, %v922_v42 }
 0x376   : > { %v2217_v6 = vpop.eup %2216  ;;  %v1079_v32 = vmul.f32 1.442695, %v1053_v40  ;;  %v1081_v34 = vmul.f32 1.442695, %v1054_v35  ;;  %v931_v40 = vmul.f32 1.442695, %v915_v45 }
 0x377   : > { %v1123_v50 = vsel %vm850_vm10, %v2217_v6, 0.0  ;;  %v3008_v53 = vpop.eup %2218 }
 0x378   : > { %1124 = vadd.xlane.f32.xlu2 %v1123_v50  ;;  %v3010_v9 = vpop.eup %2220 }
 0x379   : > { %1961 = vmatmul.msk.bf16.gmra.mxu3 %vm850_vm10, %v1319_v13  ;;  %v1320_v50 = vpack.c.bf16 %v3008_v53, %v3010_v9  ;;  %v849_v13 = vld [vmem:[#allocation3 + $0x78] sm:$0xff] }
 0x37b   : > { %v971_v63 = vpop.permute.xlu1 %970 }
 0x37c   : > { %v1044_v14 = vsub.f32 %v2727_v51, %v971_v63 }
 0x37e   : > { %v1061_v57 = vmul.f32 1.442695, %v1044_v14 }
 0x380   : > { %2222 = vpow2.f32 %v1061_v57 }
 0x381   : > { %2224 = vpow2.f32 %v937_v10 }
 0x382   : > { %2226 = vpow2.f32 %v1079_v32 }
 0x383   : > { %2228 = vpow2.f32 %v1081_v34 }
 0x384   : > { %2230 = vpow2.f32 %v945_v18 }
 0x386   : > { %v2223_v28 = vpop.eup %2222 }
 0x387   : > { %v1126_v51 = vsel %vm850_vm10, %v2223_v28, 0.0  ;;  %v1316_v38 = vpack.c.bf16 %v2223_v28, %v2217_v6  ;;  %v3022_v6 = vpop.eup %2224 }
 0x388   : > { %1127 = vadd.xlane.f32.xlu0 %v1126_v51  ;;  %v2227_v63 = vpop.eup %2226  ;;  %v1091_v51 = vld [vmem:[#allocation4] sm:$0xff] }
 0x389   : > { %1958 = vmatmul.msk.bf16.vlgmr.msrb.gmra.mxu0 %vm850_vm10, %v1316_v38  ;;  %1962 = vmatmul.msk.bf16.gmra.mxu3 %vm850_vm10, %v1320_v50  ;;  %v3026_v14 = vpop.eup %2228  ;;  %v1153_v31 = vsel %vm850_vm10, %v2227_v63, 0.0  ;;  %v916_v38 = vsub.f32 %v2790_v4, %v2796_v5  ;;  %v1092_v4 = vld [vmem:[#allocation4 + $0x8] sm:$0xff] }
 0x38a   : > { %v3031_v41 = vpop.eup %2230  ;;  %v1321_v42 = vpack.c.bf16 %v3026_v14, %v2227_v63 }
 0x38b   : > { %v933_v34 = vmul.f32 1.442695, %v916_v38 }
 0x38d   : > { %v898_v20 = vpop.xlane.xlu2 %897 }
 0x38e   : > { %v914_v16 = vmax.f32 %v849_v13, %v898_v20 }
 0x390   : > { %v930_v49 = vsub.f32 %v849_v13, %v914_v16  ;;  %1448 = vst.msk [vmem:[#allocation3 + $0x78] sm:$0xff] %vm597_vm11, %v914_v16  ;;  %1237 = vperm.xlu2 %2154, %v3022_v6  }
 0x392   : > { %v961_v46 = vmul.f32 1.442695, %v930_v49 }
 0x394   : > { %2232 = vpow2.f32 %v961_v46  ;;  %v1210_v46 = vld [vmem:[#allocation5 + $0x30] sm:$0xff] }
 0x395   : > { %2234 = vpow2.f32 %v951_v39  ;;  %v1036_v29 = vpop.permute.xlu2 %1035 }
 0x396   : > { %2236 = vpow2.f32 %v957_v61 }
 0x397   : > { %2238 = vpow2.f32 %v939_v11 }
 0x398   : > { %1257 = vperm.xlu2 %2154, %v3031_v41  }
 0x399   : > { %1963 = vmatmul.msk.bf16.gmra.mxu3 %vm850_vm10, %v1321_v42 }
 0x39a   : > { %v3036_v57 = vpop.eup %2232 }
 0x39b   : > { %1297 = vperm.xlu1 %2156, %v3036_v57   ;;  %v3043_v1 = vpop.eup %2234 }
 0x39c   : > { %1025 = vperm.xlu0 %2155, %v2935_v19   ;;  %v3047_v3 = vpop.eup %2236  ;;  %v941_v19 = vmul.f32 1.442695, %v920_v60 }
 0x39d   : > { %v3056_v21 = vpop.eup %2238 }
 0x39e   : > { %2240 = vpow2.f32 %v941_v19 }
 0x3a0   : > { %1272 = vperm.xlu2 %2154, %v3043_v1  }
 0x3a4   : > { %975 = vperm.xlu0 %2155, %v2852_v30   ;;  %v3273_v30 = vsub.f32 %v2883_v43, %v2888_v47  ;;  %v3062_v27 = vpop.eup %2240  ;;  %v1031_v47 = vpop.permute.xlu1 %1030 }
 0x3a5   : > { %v1056_v60 = vsub.f32 %v2841_v24, %v1031_v47 }
 0x3a6   : > { %v947_v25 = vmul.f32 1.442695, %v3273_v30 }
 0x3a7   : > { %v1085_v15 = vmul.f32 1.442695, %v1056_v60 }
 0x3a8   : > { %1287 = vperm.xlu2 %2154, %v3047_v3   ;;  %2242 = vpow2.f32 %v947_v25  ;;  %v1211_v25 = vld [vmem:[#allocation5 + $0x38] sm:$0xff] }
 0x3a9   : > { %2244 = vpow2.f32 %v953_v48 }
 0x3aa   : > { %2246 = vpow2.f32 %v959_v58 }
 0x3ab   : > { %2248 = vpow2.f32 %v1085_v15 }
 0x3ac   : > { %1040 = vperm.xlu0 %2155, %v914_v16   ;;  %2250 = vpow2.f32 %v931_v40  ;;  %v981_v28 = vpop.permute.xlu1 %980 }
 0x3ad   : > { %2252 = vpow2.f32 %v933_v34  ;;  %v1046_v18 = vsub.f32 %v2762_v62, %v981_v28  ;;  %v1141_v62 = vsel %vm850_vm10, %v2997_v8, 0.0  ;;  %v1147_v8 = vsel %vm850_vm10, %v3010_v9, 0.0 }
 0x3ae   : > { %v3068_v52 = vpop.eup %2242 }
 0x3af   : > { %v3074_v43 = vpop.eup %2244  ;;  %v1065_v5 = vmul.f32 1.442695, %v1046_v18 }
 0x3b0   : > { %v3080_v12 = vpop.eup %2246 }
 0x3b1   : > { %v3086_v10 = vpop.eup %2248  ;;  %2254 = vpow2.f32 %v1065_v5 }
 0x3b2   : > { %v1162_v24 = vsel %vm850_vm10, %v3086_v10, 0.0  ;;  %v3090_v35 = vpop.eup %2250 }
 0x3b3   : > { %v1107_v50 = vmul.f32 %v3090_v35, %v1091_v51  ;;  %v3105_v49 = vpop.eup %2252 }
 0x3b4   : > { %1242 = vperm.xlu0 %2155, %v3056_v21   ;;  %v3097_v13 = vpop.permute.xlu1 %1232  ;;  %v1108_v39 = vmul.f32 %v3105_v49, %v1092_v4 }
 0x3b7   : > { %v2255_v48 = vpop.eup %2254 }
 0x3b8   : > { %v1132_v60 = vsel %vm850_vm10, %v2255_v48, 0.0 }
 0x3bc   : > { %1247 = vperm.xlu0 %2155, %v3062_v27   ;;  %v1253_v63 = vpop.permute.xlu1 %1252 }
 0x3bd   : > { %v1306_v42 = vmul.f32 %v1253_v63, %v1210_v46 }
 0x3c4   : > { %1262 = vperm.xlu0 %2155, %v3068_v52   ;;  %v1268_v28 = vpop.permute.xlu1 %1267 }
 0x3cc   : > { %1277 = vperm.xlu0 %2155, %v3074_v43  }
 0x3d1   : > { %1136 = vadd.xlane.f32.xlu2 %v1135_v7  ;;  %v1057_v7 = vsub.f32 %v2845_v26, %v1036_v29  ;;  %v1156_v26 = vsel %vm850_vm10, %v3026_v14, 0.0 }
 0x3d3   : > { %v1087_v40 = vmul.f32 1.442695, %v1057_v7 }
 0x3d4   : > { %1292 = vperm.xlu0 %2155, %v3080_v12  }
 0x3d9   : > { %1154 = vadd.xlane.f32.xlu2 %v1153_v31 }
 0x3e1   : > { %1163 = vadd.xlane.f32.xlu2 %v1162_v24  ;;  %v1213_v24 = vld [vmem:[#allocation5 + $0x48] sm:$0xff] }
 0x3e2   : > { %v1309_v38 = vmul.f32 %v1268_v28, %v1213_v24  ;;  %v1215_v28 = vld [vmem:[#allocation5 + $0x58] sm:$0xff] }
 0x3eb   : > { %v1125_v0 = vpop.xlane.xlu2 %1124 }
 0x3ec   : > { %v1171_v2 = vadd.f32 %v1125_v0, %v1107_v50  ;;  %v3095_v32 = vpop.f32.mrf.mxu3 }
 0x3ee   : > { %1188 = vst.msk [vmem:[#allocation4] sm:$0xff] %vm597_vm11, %v1171_v2  ;;  %v1214_v2 = vld [vmem:[#allocation5 + $0x50] sm:$0xff] }
 0x3f3   : > { %v3103_v16 = vpop.permute.xlu2 %1237 }
 0x3f4   : > { %v3101_v20 = vpop.f32.mrf.mxu3 }
 0x3fb   : > { %v1128_v61 = vpop.xlane.xlu0 %1127  ;;  %v1258_v44 = vpop.permute.xlu2 %1257 }
 0x3fc   : > { %v1172_v11 = vadd.f32 %v1128_v61, %v1108_v39  ;;  %v1376_v19 = vpop.f32.mrf.mxu3  ;;  %v1307_v54 = vmul.f32 %v1258_v44, %v1211_v25 }
 0x3fd   : > { %v1407_v30 = vadd.f32 %v1376_v19, %v1306_v42 }
 0x3fe   : > { %1189 = vst.msk [vmem:[#allocation4 + $0x8] sm:$0xff] %vm597_vm11, %v1172_v11  ;;  %1142 = vadd.xlane.f32.xlu0 %v1141_v62 }
 0x3ff   : > { %1423 = vst.msk [vmem:[#allocation5 + $0x30] sm:$0xff] %vm630_vm8, %v1407_v30 }
 0x404   : > { %v1378_v58 = vpop.f32.mrf.mxu3 }
 0x405   : > { %v1408_v47 = vadd.f32 %v1378_v58, %v1307_v54  ;;  %v1144_v58 = vsel %vm850_vm10, %v2995_v55, 0.0 }
 0x406   : > { %1133 = vadd.xlane.f32.xlu0 %v1132_v60 }
 0x407   : > { %1424 = vst.msk [vmem:[#allocation5 + $0x38] sm:$0xff] %vm630_vm8, %v1408_v47 }
 0x40c   : > { %v1381_v15 = vpop.f32.mrf.mxu3 }
 0x40e   : > { %v1026_v31 = vpop.permute.xlu0 %1025  ;;  %1148 = vadd.xlane.f32.xlu0 %v1147_v8  ;;  %v1138_v8 = vsel %vm850_vm10, %v2985_v23, 0.0  ;;  %v1095_v23 = vld [vmem:[#allocation4 + $0x20] sm:$0xff] }
 0x40f   : > { %v1055_v45 = vsub.f32 %v2837_v22, %v1026_v31  ;;  %v1273_v22 = vpop.permute.xlu2 %1272 }
 0x410   : > { %v1310_v46 = vmul.f32 %v1273_v22, %v1214_v2 }
 0x411   : > { %v1083_v51 = vmul.f32 1.442695, %v1055_v45 }
 0x413   : > { %2256 = vpow2.f32 %v1083_v51 }
 0x414   : > { %2258 = vpow2.f32 %v1087_v40  ;;  %v1383_v50 = vpop.f32.mrf.mxu3  ;;  %v1150_v40 = vsel %vm850_vm10, %v3008_v53, 0.0 }
 0x415   : > { %v1410_v0 = vadd.f32 %v1383_v50, %v1309_v38 }
 0x416   : > { %v976_v29 = vpop.permute.xlu0 %975  ;;  %1157 = vadd.xlane.f32.xlu0 %v1156_v26 }
 0x417   : > { %1426 = vst.msk [vmem:[#allocation5 + $0x48] sm:$0xff] %vm630_vm8, %v1410_v0  ;;  %v1045_v9 = vsub.f32 %v2750_v59, %v976_v29  ;;  %v3141_v24 = vpop.permute.xlu2 %1287  ;;  %v1101_v29 = vld [vmem:[#allocation4 + $0x50] sm:$0xff] }
 0x418   : > { %v1117_v2 = vmul.f32 %v3043_v1, %v1101_v29  ;;  %v1094_v1 = vld [vmem:[#allocation4 + $0x18] sm:$0xff] }
 0x419   : > { %v2257_v34 = vpop.eup %2256  ;;  %v1063_v18 = vmul.f32 1.442695, %v1045_v9 }
 0x41a   : > { %v2259_v4 = vpop.eup %2258  ;;  %v1322_v5 = vpack.c.bf16 %v3086_v10, %v2257_v34  ;;  %v1208_v10 = vld [vmem:[#allocation5 + $0x20] sm:$0xff]  ;;  %v1159_v0 = vsel %vm850_vm10, %v2257_v34, 0.0  ;;  %v1104_v34 = vld [vmem:[#allocation4 + $0x68] sm:$0xff] }
 0x41b   : > { %2260 = vpow2.f32 %v1063_v18  ;;  %v1165_v14 = vsel %vm850_vm10, %v2259_v4, 0.0 }
 0x41c   : > { %v1386_v63 = vpop.f32.mrf.mxu3  ;;  %1964 = vmatmul.msk.bf16.gmra.mxu3 %vm850_vm10, %v1322_v5 }
 0x41d   : > { %v1411_v39 = vadd.f32 %v1386_v63, %v1310_v46  ;;  %v1097_v63 = vld [vmem:[#allocation4 + $0x30] sm:$0xff] }
 0x41e   : > { %v1041_v42 = vpop.permute.xlu0 %1040  ;;  %1166 = vadd.xlane.f32.xlu0 %v1165_v14 }
 0x41f   : > { %1427 = vst.msk [vmem:[#allocation5 + $0x50] sm:$0xff] %vm630_vm8, %v1411_v39  ;;  %v1058_v59 = vsub.f32 %v2954_v33, %v1041_v42  ;;  %v1209_v33 = vld [vmem:[#allocation5 + $0x28] sm:$0xff]  ;;  %v1113_v39 = vmul.f32 %v2972_v17, %v1097_v63 }
 0x421   : > { %v2261_v61 = vpop.eup %2260  ;;  %v1089_v11 = vmul.f32 1.442695, %v1058_v59  ;;  %v1110_v59 = vmul.f32 %v3022_v6, %v1094_v1  ;;  %v1100_v1 = vld [vmem:[#allocation4 + $0x48] sm:$0xff] }
 0x422   : > { %v1129_v19 = vsel %vm850_vm10, %v2261_v61, 0.0  ;;  %v1317_v30 = vpack.c.bf16 %v2255_v48, %v2261_v61 }
 0x423   : > { %2262 = vpow2.f32 %v1089_v11  ;;  %1130 = vadd.xlane.f32.xlu1 %v1129_v19 }
 0x424   : > { %1959 = vmatmul.msk.bf16.gmra.mxu0 %vm850_vm10, %v1317_v30  ;;  %v1388_v38 = vpop.f32.mrf.mxu3 }
 0x426   : > { %v1243_v62 = vpop.permute.xlu0 %1242 }
 0x427   : > { %v1304_v25 = vmul.f32 %v1243_v62, %v1208_v10 }
 0x429   : > { %v2263_v44 = vpop.eup %2262  ;;  %v1405_v54 = vadd.f32 %v3095_v32, %v1304_v25  ;;  %v1212_v32 = vld [vmem:[#allocation5 + $0x40] sm:$0xff] }
 0x42a   : > { %v1323_v47 = vpack.c.bf16 %v2263_v44, %v2259_v4  ;;  %v1168_v9 = vsel %vm850_vm10, %v2263_v44, 0.0  ;;  %v1120_v4 = vmul.f32 %v3047_v3, %v1104_v34  ;;  %v1099_v3 = vld [vmem:[#allocation4 + $0x40] sm:$0xff]  ;;  %v1102_v44 = vld [vmem:[#allocation4 + $0x58] sm:$0xff] }
 0x42b   : > { %1421 = vst.msk [vmem:[#allocation5 + $0x20] sm:$0xff] %vm630_vm8, %v1405_v54  ;;  %1145 = vadd.xlane.f32.xlu1 %v1144_v58  ;;  %v1115_v30 = vmul.f32 %v3068_v52, %v1099_v3  ;;  %v1283_v54 = vpop.permute.xlu1 %1282  ;;  %v1118_v6 = vmul.f32 %v3074_v43, %v1102_v44 }
 0x42c   : > { %1965 = vmatmul.msk.bf16.gmra.mxu3 %vm850_vm10, %v1323_v47 }
 0x42e   : > { %v1248_v48 = vpop.permute.xlu0 %1247 }
 0x42f   : > { %v1305_v60 = vmul.f32 %v1248_v48, %v1209_v33  ;;  %v1105_v48 = vld [vmem:[#allocation4 + $0x70] sm:$0xff] }
 0x431   : > { %v1406_v7 = vadd.f32 %v3101_v20, %v1305_v60  ;;  %v3164_v60 = vpop.f32.mrf.mxu0 }
 0x433   : > { %1422 = vst.msk [vmem:[#allocation5 + $0x28] sm:$0xff] %vm630_vm8, %v1406_v7  ;;  %1139 = vadd.xlane.f32.xlu1 %v1138_v8  ;;  %v3162_v52 = vpop.permute.xlu1 %1297  ;;  %v1121_v7 = vmul.f32 %v3080_v12, %v1105_v48 }
 0x436   : > { %v1263_v31 = vpop.permute.xlu0 %1262 }
 0x437   : > { %v1308_v55 = vmul.f32 %v1263_v31, %v1212_v32  ;;  %v1093_v31 = vld [vmem:[#allocation4 + $0x10] sm:$0xff] }
 0x438   : > { %v1109_v43 = vmul.f32 %v2969_v56, %v1093_v31 }
 0x439   : > { %v1409_v45 = vadd.f32 %v1381_v15, %v1308_v55  ;;  %v1111_v15 = vmul.f32 %v3056_v21, %v1095_v23 }
 0x43b   : > { %1425 = vst.msk [vmem:[#allocation5 + $0x40] sm:$0xff] %vm630_vm8, %v1409_v45  ;;  %1151 = vadd.xlane.f32.xlu1 %v1150_v40  ;;  %v3169_v40 = vpop.f32.mrf.mxu0 }
 0x43e   : > { %v1278_v20 = vpop.permute.xlu0 %1277 }
 0x43f   : > { %v1311_v51 = vmul.f32 %v1278_v20, %v1215_v28  ;;  %v1098_v28 = vld [vmem:[#allocation4 + $0x38] sm:$0xff]  ;;  %v1216_v20 = vld [vmem:[#allocation5 + $0x60] sm:$0xff] }
 0x440   : > { %v1312_v23 = vmul.f32 %v1283_v54, %v1216_v20 }
 0x441   : > { %v1412_v50 = vadd.f32 %v1388_v38, %v1311_v51  ;;  %v1206_v51 = vld [vmem:[#allocation5 + $0x10] sm:$0xff]  ;;  %v1114_v38 = vmul.f32 %v3031_v41, %v1098_v28  ;;  %v1207_v41 = vld [vmem:[#allocation5 + $0x18] sm:$0xff] }
 0x442   : > { %v1303_v63 = vmul.f32 %v3103_v16, %v1207_v41 }
 0x443   : > { %1428 = vst.msk [vmem:[#allocation5 + $0x58] sm:$0xff] %vm630_vm8, %v1412_v50  ;;  %1160 = vadd.xlane.f32.xlu1 %v1159_v0 }
 0x444   : > { %v1137_v26 = vpop.xlane.xlu2 %1136 }
 0x445   : > { %v1175_v53 = vadd.f32 %v1137_v26, %v1111_v15  ;;  %v1302_v15 = vmul.f32 %v3097_v13, %v1206_v51 }
 0x446   : > { %v3152_v21 = vpop.permute.xlu0 %1292 }
 0x447   : > { %1192 = vst.msk [vmem:[#allocation4 + $0x20] sm:$0xff] %vm597_vm11, %v1175_v53 }
 0x44b   : > { %1169 = vadd.xlane.f32.xlu1 %v1168_v9  ;;  %v1096_v9 = vld [vmem:[#allocation4 + $0x28] sm:$0xff] }
 0x44c   : > { %v1155_v22 = vpop.xlane.xlu2 %1154 }
 0x44d   : > { %v1181_v18 = vadd.f32 %v1155_v22, %v1117_v2  ;;  %v1217_v2 = vld [vmem:[#allocation5 + $0x68] sm:$0xff]  ;;  %v1112_v22 = vmul.f32 %v3062_v27, %v1096_v9 }
 0x44e   : > { %v1313_v34 = vmul.f32 %v3141_v24, %v1217_v2  ;;  %v1116_v24 = vmul.f32 %v2976_v36, %v1100_v1  ;;  %v1219_v36 = vld [vmem:[#allocation5 + $0x78] sm:$0xff]  ;;  %v1205_v1 = vld [vmem:[#allocation5 + $0x8] sm:$0xff] }
 0x44f   : > { %1198 = vst.msk [vmem:[#allocation4 + $0x50] sm:$0xff] %vm597_vm11, %v1181_v18 }
 0x454   : > { %v1164_v5 = vpop.xlane.xlu2 %1163 }
 0x455   : > { %v1184_v46 = vadd.f32 %v1164_v5, %v1120_v4 }
 0x457   : > { %1201 = vst.msk [vmem:[#allocation4 + $0x68] sm:$0xff] %vm597_vm11, %v1184_v46 }
 0x45e   : > { %v1481_v20 = vld [vmem:[#allocation4 + $0x68] sm:$0xff] }
 0x471   : > { %v1143_v14 = vpop.xlane.xlu0 %1142 }
 0x472   : > { %v1177_v42 = vadd.f32 %v1143_v14, %v1113_v39 }
 0x474   : > { %1194 = vst.msk [vmem:[#allocation4 + $0x30] sm:$0xff] %vm597_vm11, %v1177_v42 }
 0x479   : > { %v1134_v61 = vpop.xlane.xlu0 %1133 }
 0x47a   : > { %v1174_v11 = vadd.f32 %v1134_v61, %v1110_v59  ;;  %v1218_v59 = vld [vmem:[#allocation5 + $0x70] sm:$0xff]  ;;  %v1472_v61 = vld [vmem:[#allocation4 + $0x20] sm:$0xff] }
 0x47b   : > { %v1474_v19 = vld [vmem:[#allocation4 + $0x30] sm:$0xff]  ;;  %v1314_v16 = vmul.f32 %v3152_v21, %v1218_v59  ;;  %v1457_v59 = vld [vmem:[#allocation5 + $0x28] sm:$0xff] }
 0x47c   : > { %1191 = vst.msk [vmem:[#allocation4 + $0x18] sm:$0xff] %vm597_vm11, %v1174_v11  ;;  %2264 = vrcp.f32 %v1474_v19 }
 0x481   : > { %v1149_v10 = vpop.xlane.xlu0 %1148 }
 0x482   : > { %v2265_v62 = vpop.eup %2264  ;;  %v1179_v25 = vadd.f32 %v1149_v10, %v1115_v30 }
 0x483   : > { %1532 = vperm.xlu0 %2155, %v2265_v62   ;;  %v1471_v17 = vld [vmem:[#allocation4 + $0x18] sm:$0xff] }
 0x484   : > { %1196 = vst.msk [vmem:[#allocation4 + $0x40] sm:$0xff] %vm597_vm11, %v1179_v25  ;;  %2266 = vrcp.f32 %v1471_v17  ;;  %v1103_v17 = vld [vmem:[#allocation4 + $0x60] sm:$0xff] }
 0x485   : > { %v1119_v44 = vmul.f32 %v2980_v37, %v1103_v17  ;;  %v1106_v37 = vld [vmem:[#allocation4 + $0x78] sm:$0xff] }
 0x486   : > { %v1122_v31 = vmul.f32 %v3036_v57, %v1106_v37 }
 0x489   : > { %v1158_v58 = vpop.xlane.xlu0 %1157 }
 0x48a   : > { %v2267_v47 = vpop.eup %2266  ;;  %v1182_v33 = vadd.f32 %v1158_v58, %v1118_v6  ;;  %v1315_v6 = vmul.f32 %v3162_v52, %v1219_v36 }
 0x48b   : > { %1517 = vperm.xlu0 %2155, %v2267_v47   ;;  %v1476_v18 = vld [vmem:[#allocation4 + $0x40] sm:$0xff] }
 0x48c   : > { %1199 = vst.msk [vmem:[#allocation4 + $0x58] sm:$0xff] %vm597_vm11, %v1182_v33 }
 0x491   : > { %v1167_v8 = vpop.xlane.xlu0 %1166 }
 0x492   : > { %v1185_v32 = vadd.f32 %v1167_v8, %v1121_v7  ;;  %v1478_v7 = vld [vmem:[#allocation4 + $0x50] sm:$0xff] }
 0x493   : > { %v1479_v54 = vld [vmem:[#allocation4 + $0x58] sm:$0xff] }
 0x494   : > { %1202 = vst.msk [vmem:[#allocation4 + $0x70] sm:$0xff] %vm597_vm11, %v1185_v32 }
 0x496   : > { %v1131_v55 = vpop.xlane.xlu1 %1130 }
 0x497   : > { %v1173_v45 = vadd.f32 %v1131_v55, %v1109_v43 }
 0x499   : > { %1190 = vst.msk [vmem:[#allocation4 + $0x10] sm:$0xff] %vm597_vm11, %v1173_v45 }
 0x49b   : > { %v1482_v52 = vld [vmem:[#allocation4 + $0x70] sm:$0xff] }
 0x49e   : > { %v1146_v12 = vpop.xlane.xlu1 %1145 }
 0x49f   : > { %v1178_v50 = vadd.f32 %v1146_v12, %v1114_v38  ;;  %v1391_v0 = vpop.f32.mrf.mxu3 }
 0x4a0   : > { %v1413_v26 = vadd.f32 %v1391_v0, %v1312_v23  ;;  %v1470_v53 = vld [vmem:[#allocation4 + $0x10] sm:$0xff]  ;;  %v1468_v0 = vld [vmem:[#allocation4] sm:$0xff] }
 0x4a1   : > { %1195 = vst.msk [vmem:[#allocation4 + $0x38] sm:$0xff] %vm597_vm11, %v1178_v50  ;;  %v1366_v56 = vpop.f32.mrf.mxu0  ;;  %2268 = vrcp.f32 %v1470_v53 }
 0x4a2   : > { %1429 = vst.msk [vmem:[#allocation5 + $0x60] sm:$0xff] %vm630_vm8, %v1413_v26  ;;  %v1403_v29 = vadd.f32 %v1366_v56, %v1302_v15  ;;  %2270 = vrcp.f32 %v1476_v18  ;;  %v1469_v26 = vld [vmem:[#allocation4 + $0x8] sm:$0xff] }
 0x4a4   : > { %1419 = vst.msk [vmem:[#allocation5 + $0x10] sm:$0xff] %vm630_vm8, %v1403_v29 }
 0x4a6   : > { %v1140_v13 = vpop.xlane.xlu1 %1139 }
 0x4a7   : > { %v2269_v4 = vpop.eup %2268  ;;  %v1176_v5 = vadd.f32 %v1140_v13, %v1112_v22  ;;  %v1393_v46 = vpop.f32.mrf.mxu3 }
 0x4a8   : > { %v1414_v39 = vadd.f32 %v1393_v46, %v1313_v34  ;;  %1512 = vperm.xlu2 %2154, %v2269_v4   ;;  %v1475_v14 = vld [vmem:[#allocation4 + $0x38] sm:$0xff]  ;;  %v2271_v11 = vpop.eup %2270 }
 0x4a9   : > { %1193 = vst.msk [vmem:[#allocation4 + $0x28] sm:$0xff] %vm597_vm11, %v1176_v5  ;;  %v1368_v42 = vpop.f32.mrf.mxu0  ;;  %2272 = vrcp.f32 %v1475_v14  ;;  %v1458_v5 = vld [vmem:[#allocation5 + $0x30] sm:$0xff] }
 0x4aa   : > { %1430 = vst.msk [vmem:[#allocation5 + $0x68] sm:$0xff] %vm630_vm8, %v1414_v39  ;;  %v1404_v27 = vadd.f32 %v1368_v42, %v1303_v63  ;;  %2274 = vrcp.f32 %v1472_v61  ;;  %v1459_v63 = vld [vmem:[#allocation5 + $0x38] sm:$0xff] }
 0x4ab   : > { %v1454_v41 = vld [vmem:[#allocation5 + $0x10] sm:$0xff] }
 0x4ac   : > { %1420 = vst.msk [vmem:[#allocation5 + $0x18] sm:$0xff] %vm630_vm8, %v1404_v27 }
 0x4ae   : > { %v1152_v19 = vpop.xlane.xlu1 %1151 }
 0x4af   : > { %v2273_v3 = vpop.eup %2272  ;;  %v1180_v30 = vadd.f32 %v1152_v19, %v1116_v24  ;;  %v1396_v10 = vpop.f32.mrf.mxu3  ;;  %v1456_v24 = vld [vmem:[#allocation5 + $0x20] sm:$0xff] }
 0x4b0   : > { %v1415_v62 = vadd.f32 %v1396_v10, %v1314_v16  ;;  %1542 = vperm.xlu2 %2154, %v2271_v11   ;;  %1537 = vperm.xlu1 %2156, %v2273_v3   ;;  %v1473_v25 = vld [vmem:[#allocation4 + $0x28] sm:$0xff]  ;;  %v2275_v21 = vpop.eup %2274 }
 0x4b1   : > { %1197 = vst.msk [vmem:[#allocation4 + $0x48] sm:$0xff] %vm597_vm11, %v1180_v30  ;;  %2276 = vrcp.f32 %v1473_v25  ;;  %v1461_v25 = vld [vmem:[#allocation5 + $0x48] sm:$0xff] }
 0x4b2   : > { %1431 = vst.msk [vmem:[#allocation5 + $0x70] sm:$0xff] %vm630_vm8, %v1415_v62  ;;  %2278 = vrcp.f32 %v1479_v54  ;;  %v1460_v62 = vld [vmem:[#allocation5 + $0x40] sm:$0xff] }
 0x4b3   : > { %v1455_v2 = vld [vmem:[#allocation5 + $0x18] sm:$0xff] }
 0x4b6   : > { %v1161_v58 = vpop.xlane.xlu1 %1160 }
 0x4b7   : > { %v2277_v47 = vpop.eup %2276  ;;  %v1183_v33 = vadd.f32 %v1161_v58, %v1119_v44  ;;  %v1398_v48 = vpop.f32.mrf.mxu3  ;;  %v1463_v44 = vld [vmem:[#allocation5 + $0x58] sm:$0xff] }
 0x4b8   : > { %v1416_v8 = vadd.f32 %v1398_v48, %v1315_v6  ;;  %1527 = vperm.xlu2 %2154, %v2277_v47   ;;  %1522 = vperm.xlu1 %2156, %v2275_v21   ;;  %v1477_v32 = vld [vmem:[#allocation4 + $0x48] sm:$0xff]  ;;  %v2279_v43 = vpop.eup %2278  ;;  %v1462_v21 = vld [vmem:[#allocation5 + $0x50] sm:$0xff] }
 0x4b9   : > { %1200 = vst.msk [vmem:[#allocation4 + $0x60] sm:$0xff] %vm597_vm11, %v1183_v33  ;;  %2280 = vrcp.f32 %v1477_v32  ;;  %v1465_v32 = vld [vmem:[#allocation5 + $0x68] sm:$0xff] }
 0x4ba   : > { %1432 = vst.msk [vmem:[#allocation5 + $0x78] sm:$0xff] %vm630_vm8, %v1416_v8  ;;  %2282 = vrcp.f32 %v1478_v7 }
 0x4bb   : > { %2284 = vrcp.f32 %v1482_v52 }
 0x4be   : > { %v1170_v55 = vpop.xlane.xlu1 %1169 }
 0x4bf   : > { %v2281_v45 = vpop.eup %2280  ;;  %v1186_v28 = vadd.f32 %v1170_v55, %v1122_v31  ;;  %v1466_v55 = vld [vmem:[#allocation5 + $0x70] sm:$0xff] }
 0x4c0   : > { %v2283_v51 = vpop.eup %2282  ;;  %1557 = vperm.xlu2 %2154, %v2279_v43   ;;  %1547 = vperm.xlu0 %2155, %v2281_v45   ;;  %v1480_v38 = vld [vmem:[#allocation4 + $0x60] sm:$0xff] }
 0x4c1   : > { %1203 = vst.msk [vmem:[#allocation4 + $0x78] sm:$0xff] %vm597_vm11, %v1186_v28  ;;  %1552 = vperm.xlu1 %2156, %v2283_v51   ;;  %2286 = vrcp.f32 %v1480_v38  ;;  %v2285_v23 = vpop.eup %2284  ;;  %v1204_v43 = vld [vmem:[#allocation5] sm:$0xff]  ;;  %v1467_v45 = vld [vmem:[#allocation5 + $0x78] sm:$0xff] }
 0x4c2   : > { %2288 = vrcp.f32 %v1481_v20 }
 0x4c7   : > { %v2287_v12 = vpop.eup %2286 }
 0x4c8   : > { %v2289_v50 = vpop.eup %2288  ;;  %1562 = vperm.xlu0 %2155, %v2287_v12   ;;  %1572 = vperm.xlu2 %2154, %v2285_v23   ;;  %v1483_v57 = vld [vmem:[#allocation4 + $0x78] sm:$0xff] }
 0x4c9   : > { %1567 = vperm.xlu1 %2156, %v2289_v50   ;;  %2290 = vrcp.f32 %v1483_v57  ;;  %v2009_v57 = vld [vmem:[#allocation11 + $0x18] sm:$0xff] }
 0x4ca   : > { %2292 = vrcp.f32 %v1468_v0  ;;  %1711 = vmatpush.bf16.msra.mxu0 %v2009_v57  ;;  %v2008_v0 = vld [vmem:[#allocation11 + $0x10] sm:$0xff] }
 0x4cb   : > { %2294 = vrcp.f32 %v1469_v26  ;;  %v2006_v26 = vld [vmem:[#allocation11] sm:$0xff] }
 0x4ce   : > { %1712 = vmatpush.bf16.msra.mxu0 %v2008_v0 }
 0x4cf   : > { %v2291_v15 = vpop.eup %2290 }
 0x4d0   : > { %1577 = vperm.xlu0 %2155, %v2291_v15   ;;  %1227 = vperm.xlu2 %2154, %v3105_v49   ;;  %v2293_v53 = vpop.eup %2292  ;;  %v2007_v15 = vld [vmem:[#allocation11 + $0x8] sm:$0xff] }
 0x4d1   : > { %1222 = vperm.xlu1 %2156, %v3090_v35   ;;  %v2295_v56 = vpop.eup %2294 }
 0x4d2   : > { %1713 = vmatpush.bf16.msra.mxu0 %v2007_v15 }
 0x4d6   : > { %1714 = vmatpush.bf16.msra.mxu0 %v2006_v26 }
 0x4d8   : > { %1502 = vperm.xlu0 %2155, %v2293_v53  }
 0x4d9   : > { %1507 = vperm.xlu1 %2156, %v2295_v56  }
 0x4f5   : > { %v1533_v29 = vpop.permute.xlu0 %1532 }
 0x4f6   : > { %v1586_v14 = vmul.f32 %v1533_v29, %v1458_v5 }
 0x4fd   : > { %v1518_v9 = vpop.permute.xlu0 %1517 }
 0x4fe   : > { %v1583_v18 = vmul.f32 %v1518_v9, %v1455_v2 }
 0x502   : > { %v1513_v22 = vpop.permute.xlu2 %1512 }
 0x503   : > { %v1582_v34 = vmul.f32 %v1513_v22, %v1454_v41 }
 0x505   : > { %v2157_v13 = vpack.i.bf16 %v1583_v18, %v1582_v34 }
 0x507   : > { %2158 = vrot.lane.b32.xlu2 %v2157_v13, %s2491_s20 }
 0x50a   : > { %v1543_v49 = vpop.permute.xlu2 %1542 }
 0x50b   : > { %v1588_v36 = vmul.f32 %v1543_v49, %v1460_v62 }
 0x512   : > { %v1528_v4 = vpop.permute.xlu2 %1527 }
 0x513   : > { %v1585_v16 = vmul.f32 %v1528_v4, %v1457_v59 }
 0x51a   : > { %v1558_v35 = vpop.permute.xlu2 %1557 }
 0x51b   : > { %v1591_v58 = vmul.f32 %v1558_v35, %v1463_v44 }
 0x522   : > { %v1538_v46 = vpop.permute.xlu1 %1537  ;;  %v1573_v39 = vpop.permute.xlu2 %1572 }
 0x523   : > { %v1587_v42 = vmul.f32 %v1538_v46, %v1459_v63  ;;  %v1594_v20 = vmul.f32 %v1573_v39, %v1466_v55 }
 0x525   : > { %v2162_v27 = vpack.i.bf16 %v1587_v42, %v1586_v14 }
 0x527   : > { %2163 = vrot.lane.b32.xlu1 %v2162_v27, %s2492_s21 }
 0x52a   : > { %v1523_v61 = vpop.permute.xlu1 %1522  ;;  %v1228_v11 = vpop.permute.xlu2 %1227 }
 0x52b   : > { %v1584_v19 = vmul.f32 %v1523_v61, %v1456_v24  ;;  %v1301_v3 = vmul.f32 %v1228_v11, %v1205_v1 }
 0x52d   : > { %v2167_v30 = vpack.i.bf16 %v1585_v16, %v1584_v19  ;;  %v1402_v10 = vadd.f32 %v3169_v40, %v1301_v3  ;;  %v1464_v40 = vld [vmem:[#allocation5 + $0x60] sm:$0xff] }
 0x52f   : > { %1418 = vst.msk [vmem:[#allocation5 + $0x8] sm:$0xff] %vm630_vm8, %v1402_v10  ;;  %2168 = vrot.lane.b32.xlu0 %v2167_v30, %s2493_s23  ;;  %s2406_s23 = scalar_lea.hbm %s3255_s7, 32 }
 0x530   : > { %p2408_p13 = scmp.lt.s32.totalorder %s2406_s23, %s2402_s27 }
 0x532   : > { %v1548_v17 = vpop.permute.xlu0 %1547  ;;  %p2409_p0 = por %p2408_p13, %p2407_p12 }
 0x533   : > { %v1589_v54 = vmul.f32 %v1548_v17, %v1461_v25  ;;  %v1553_v6 = vpop.permute.xlu1 %1552 }
 0x534   : > { %v1590_v47 = vmul.f32 %v1553_v6, %v1462_v21  ;;  %p2410_p3 = pnand %p2409_p0, %p2405_p10 }
 0x535   : > { %v2172_v33 = vpack.i.bf16 %v1589_v54, %v1588_v36 }
 0x536   : > { %v2177_v48 = vpack.i.bf16 %v1591_v58, %v1590_v47 }
 0x537   : > { %2173 = vrot.lane.b32.xlu2 %v2172_v33, %s2494_s30 }
 0x538   : > { %2178 = vrot.lane.b32.xlu0 %v2177_v48, %s2495_s8 }
 0x53a   : > { %v1563_v7 = vpop.permute.xlu0 %1562 }
 0x53b   : > { %v1592_v8 = vmul.f32 %v1563_v7, %v1464_v40  ;;  %v1568_v37 = vpop.permute.xlu1 %1567 }
 0x53c   : > { %v1593_v31 = vmul.f32 %v1568_v37, %v1465_v32 }
 0x53e   : > { %v2182_v52 = vpack.i.bf16 %v1593_v31, %v1592_v8 }
 0x540   : > { %2183 = vrot.lane.b32.xlu1 %v2182_v52, %s2496_s10 }
 0x542   : > { %v1578_v28 = vpop.permute.xlu0 %1577 }
 0x543   : > { %v1595_v51 = vmul.f32 %v1578_v28, %v1467_v45  ;;  %v1223_v38 = vpop.permute.xlu1 %1222 }
 0x544   : > { %v1300_v23 = vmul.f32 %v1223_v38, %v1204_v43 }
 0x545   : > { %v2187_v12 = vpack.i.bf16 %v1595_v51, %v1594_v20 }
 0x546   : > { %v1401_v50 = vadd.f32 %v3164_v60, %v1300_v23  ;;  %v1453_v60 = vld [vmem:[#allocation5 + $0x8] sm:$0xff] }
 0x547   : > { %2188 = vrot.lane.b32.xlu2 %v2187_v12, %s2497_s18 }
 0x548   : > { %1417 = vst.msk [vmem:[#allocation5] sm:$0xff] %vm630_vm8, %v1401_v50 }
 0x54a   : > { %v1503_v53 = vpop.permute.xlu0 %1502 }
 0x54b   : > { %v1508_v29 = vpop.permute.xlu1 %1507 }
 0x54c   : > { %v1581_v4 = vmul.f32 %v1508_v29, %v1453_v60 }
 0x54f   : > { %v1452_v2 = vld [vmem:[#allocation5] sm:$0xff] }
 0x550   : > { %v1580_v49 = vmul.f32 %v1503_v53, %v1452_v2 }
 0x561   : > { %v2159_v56 = vpop.permute.xlu2 %2158 }
 0x562   : > { %v2161_v41 = vunpack.i.h.bf16 %v2159_v56  ;;  %v2160_v22 = vunpack.i.l.bf16 %v2159_v56 }
 0x564   : > { %v1653_v5 = vsel %vm630_vm8, %v1581_v4, %v2161_v41  ;;  %v1652_v46 = vsel %vm630_vm8, %v1580_v49, %v2160_v22 }
 0x591   : > { %v2174_v18 = vpop.permute.xlu2 %2173 }
 0x592   : > { %v2176_v11 = vunpack.i.h.bf16 %v2174_v18  ;;  %v2175_v16 = vunpack.i.l.bf16 %v2174_v18 }
 0x599   : > { %v2164_v35 = vpop.permute.xlu1 %2163 }
 0x59a   : > { %v2166_v42 = vunpack.i.h.bf16 %v2164_v35  ;;  %v2165_v27 = vunpack.i.l.bf16 %v2164_v35 }
 0x5a1   : > { %v2169_v9 = vpop.permute.xlu0 %2168  ;;  %v2189_v19 = vpop.permute.xlu2 %2188 }
 0x5a2   : > { %v2171_v34 = vunpack.i.h.bf16 %v2169_v9  ;;  %v2170_v13 = vunpack.i.l.bf16 %v2169_v9  ;;  %v2191_v17 = vunpack.i.h.bf16 %v2189_v19  ;;  %v2190_v36 = vunpack.i.l.bf16 %v2189_v19 }
 0x5a4   : > { %v1654_v63 = vsel %vm850_vm10, %v1652_v46, %v2170_v13  ;;  %v1655_v39 = vsel %vm850_vm10, %v1653_v5, %v2171_v34 }
 0x5a5   : > { %v1657_v1 = vsel %vm1656_vm12, %v1654_v63, %v2165_v27  ;;  %v1658_v59 = vsel %vm1656_vm12, %v1655_v39, %v2166_v42 }
 0x5a6   : > { %v1660_v30 = vsel %vm1659_vm13, %v1657_v1, %v2175_v16  ;;  %v1661_v10 = vsel %vm1659_vm13, %v1658_v59, %v2176_v11 }
 0x5aa   : > { %v2179_v14 = vpop.permute.xlu0 %2178 }
 0x5ab   : > { %v2181_v24 = vunpack.i.h.bf16 %v2179_v14  ;;  %v2180_v61 = vunpack.i.l.bf16 %v2179_v14 }
 0x5ad   : > { %v1663_v44 = vsel %vm1662_vm14, %v1660_v30, %v2180_v61  ;;  %v1664_v54 = vsel %vm1662_vm14, %v1661_v10, %v2181_v24 }
 0x5b2   : > { %v2184_v3 = vpop.permute.xlu1 %2183 }
 0x5b3   : > { %v2186_v62 = vunpack.i.h.bf16 %v2184_v3  ;;  %v2185_v25 = vunpack.i.l.bf16 %v2184_v3 }
 0x5b5   : > { %v1666_v21 = vsel %vm1665_vm15, %v1663_v44, %v2185_v25  ;;  %v1667_v6 = vsel %vm1665_vm15, %v1664_v54, %v2186_v62 }
 0x5b6   : > { %v1669_v58 = vsel %vm1668_vm1, %v1666_v21, %v2190_v36  ;;  %v1670_v47 = vsel %vm1668_vm1, %v1667_v6, %v2191_v17 }
 0x5b7   : > { %v1671_v33 = vpack.c.bf16 %v1670_v47, %v1669_v58 }
 0x5b9   : > { %1982 = vmatmul.msk.bf16.vlgmr.msra.gmra.mxu0 %vm402_vm0, %v1671_v33 }
 0x636   : > { %v1716_v48 = vpop.f32.mrf.mxu0 }
 0x637   : > { %1721 = vst.msk [vmem:[%s382_s4] sm:$0xff] %vm402_vm0, %v1716_v48 }
 0x63e   : > { %v1718_v40 = vpop.f32.mrf.mxu0 }
 0x63f   : > { %1722 = vst.msk [vmem:[%s382_s4 + $0x8] sm:$0xff] %vm402_vm0, %v1718_v40 }
 0x640   : > { %2413 = shalt.err (!%p2410_p3)
}
 0x641   : > { %s2498_s14 = smov 128  }
 0x642   : > { %2023 = dma.vmem_to_hbm [thread:$0]  (%p2622_p7), %s1739_s13, 256, %s1741_s9, %s1724_s11, %s2498_s14, %s2498_s14, %s2491_s20  }
 0x643 PF: > { %s3276_s10 = sld [smem:[#allocation16_spill]]  ;;  %p2037_p5 = pnand %p1873_p11, %p2588_p6 }
 0x645   : > { %p2038_p9 = pneg %p2037_p5 }
 0x649   : > { %s1755_s17 = sand.u32 1, %s3276_s10  }
 0x64a   : > { %s1756_s4 = scalar_lea.sflag [#allocation8], %s1755_s17 }
 0x64b   : > { %2447 = dma.done.wait (%p2038_p9), %s1756_s4, 256  }
 0x64c   : > { %2449 = vsyncadd (%p2038_p9), %s1756_s4, 4294967040  ;;  %s24_s29 = sadd.s32 1, %s2472_s29   ;;  %s3278_s15 = sld [smem:[#allocation18_spill]] }
 0x64d   : > { %p21_p2 = scmp.ge.s32.totalorder %s24_s29, 4   ;;  %s3279_s24 = smov %s2456_s25 }
 0x64e   : > { %s3280_s25 = smov %s2460_s26  ;;  %s3281_s26 = smov %s2631_s22 }
 0x64f   : > { %s3282_s27 = smov %s2468_s28  ;;  %23 = sbr.rel (!%p21_p2) target bundleno = 10 (0xa), region = 112 }
 0x652   : > { %s3283_s28 = smov %s3278_s15 }
 0x654   :  { %1762 = vsyncpa [#allocation7], 1 }
 0x655   :  { %1764 = vsyncpa [#allocation7 + $0x1], 1 }
 0x656   :  { %1765 = vsyncpa [#allocation10], 1 }
 0x657   :  { %1766 = vsyncpa [#allocation8], 1 }
 0x658   :  { %1768 = vsyncpa [#allocation8 + $0x1], 1 }

</bundles_post_ra>
